<compile_context>
chip_gen: v6e
topology: v6e:2x2x1
jax: 0.10.0
libtpu: 0.0.40
codegen_flags: <defaults>
</compile_context>

<pallas_src>
import jax
import jax.numpy as jnp
from jax.experimental import pallas as pl
from jax.experimental.pallas import tpu as pltpu

EPS = 1e-5

# bf16 operands would halve activation/weight VMEM+HBM bytes and double MXU
# throughput on v6e/v7x; kept f32 here so the small-shape correctness check
# against the f32 XLA reference stays tight.  Flip to jnp.bfloat16 in prod.
MXU_DTYPE = jnp.float32


def _cparams():
    # 32 MiB scoped VMEM request is safe on v5e (128 MiB), v6e (128 MiB) and
    # v7x (64 MiB physical); per-step footprint here is far below that.
    return pltpu.CompilerParams(
        dimension_semantics=("parallel",),
        vmem_limit_bytes=32 * 1024 * 1024,
    )


# ---------------------------------------------------------------------------
# In-kernel helpers
# ---------------------------------------------------------------------------
def _conv3x3_from_padded(xp_ref, w_ref):
    """3x3 conv as ONE MXU matmul.

    xp_ref: (Hp+2, Wp+2, C) zero-padded input tile (VMEM scratch).
    w_ref : (9*C, Cout) packed weights, K index = (dy, dx, c) row-major.
    Returns (Hp*Wp, Cout) f32.
    """
    Hp = xp_ref.shape[0] - 2
    Wp = xp_ref.shape[1] - 2
    C = xp_ref.shape[2]
    taps = []
    for dy in range(3):
        for dx in range(3):
            taps.append(xp_ref[dy:dy + Hp, dx:dx + Wp, :])
    k = jnp.concatenate(taps, axis=-1).reshape(Hp * Wp, 9 * C)   # (M, 9C)
    return jnp.dot(k.astype(MXU_DTYPE), w_ref[...].astype(MXU_DTYPE),
                   preferred_element_type=jnp.float32)


def _partial_stats(y):
    """Single-pass partial BN stats of a (M, C) tile -> (1, 2, C) [sum, sum_sq]."""
    s = jnp.sum(y, axis=0, keepdims=True)
    sq = jnp.sum(y * y, axis=0, keepdims=True)
    return jnp.concatenate([s, sq], axis=0)[None]


# ---------------------------------------------------------------------------
# Kernels
# ---------------------------------------------------------------------------
def _pool_conv_stats_kernel(x_ref, w_ref, y_ref, st_ref, xp_ref):
    """Fused 2x2 max-pool -> zero-pad -> 3x3 conv -> partial BN stats.

    x_ref : (1, 2*Hp, Wp, 2*Cin)  NHWC input with the W pool-pair folded into
            the lane axis by a FREE host-side reshape (no strided HBM views).
    w_ref : (9*Cin, Cmid) packed conv1 weights.
    y_ref : (1, Hp*Wp, Cmid) pre-BN conv output.
    st_ref: (1, 2, Cmid) per-batch-block [sum, sum_sq].
    xp_ref: (Hp+2, Wp+2, Cin) VMEM scratch (zero-padded halo, padding=1).
    """
    Hp = xp_ref.shape[0] - 2
    Wp = xp_ref.shape[1] - 2
    Cin = xp_ref.shape[2]

    x = x_ref[0]                                           # (2*Hp, Wp, 2*Cin)
    pw = jnp.maximum(x[:, :, :Cin], x[:, :, Cin:])         # max over W pair
    pooled = jnp.max(pw.reshape(Hp, 2, Wp, Cin), axis=1)   # max over H pair

    xp_ref[...] = jnp.zeros_like(xp_ref)                   # zero halo
    xp_ref[1:Hp + 1, 1:Wp + 1, :] = pooled

    y = _conv3x3_from_padded(xp_ref, w_ref)                # (Hp*Wp, Cmid)
    y_ref[...] = y[None]
    st_ref[...] = _partial_stats(y)


def _bnrelu_conv_stats_kernel(y_in_ref, ss_ref, w_ref, y_ref, st_ref, xp_ref):
    """BN(batch stats)+ReLU of conv1 output, then 3x3 conv2 + partial stats.

    y_in_ref: (1, Hp*Wp, Cmid) pre-BN conv1 output.
    ss_ref  : (2, Cmid) [scale, shift] folded from mean/var/gamma/beta.
    w_ref   : (9*Cmid, Cout) packed conv2 weights.
    """
    Hp = xp_ref.shape[0] - 2
    Wp = xp_ref.shape[1] - 2

    a = y_in_ref[0]                                        # (Hp*Wp, Cmid)
    a = jnp.maximum(a * ss_ref[0:1, :] + ss_ref[1:2, :], 0.0)

    xp_ref[...] = jnp.zeros_like(xp_ref)
    xp_ref[1:Hp + 1, 1:Wp + 1, :] = a.reshape(Hp, Wp, a.shape[-1])

    y = _conv3x3_from_padded(xp_ref, w_ref)                # (Hp*Wp, Cout)
    y_ref[...] = y[None]
    st_ref[...] = _partial_stats(y)


def _bnrelu_kernel(y_in_ref, ss_ref, o_ref):
    """Final BN(batch stats)+ReLU."""
    a = y_in_ref[0]
    o_ref[...] = jnp.maximum(a * ss_ref[0:1, :] + ss_ref[1:2, :], 0.0)[None]


# ---------------------------------------------------------------------------
# pallas_call wrappers
# ---------------------------------------------------------------------------
def _pool_conv1(xr, w1p, Cmid):
    N, H_in, Wp, C2 = xr.shape
    Cin = C2 // 2
    Hp = H_in // 2
    M = Hp * Wp
    return pl.pallas_call(
        _pool_conv_stats_kernel,
        grid_spec=pltpu.PrefetchScalarGridSpec(
            num_scalar_prefetch=0,
            grid=(N,),
            in_specs=[
                pl.BlockSpec((1, H_in, Wp, C2), lambda n: (n, 0, 0, 0)),
                pl.BlockSpec((9 * Cin, Cmid), lambda n: (0, 0)),
            ],
            out_specs=[
                pl.BlockSpec((1, M, Cmid), lambda n: (n, 0, 0)),
                pl.BlockSpec((1, 2, Cmid), lambda n: (n, 0, 0)),
            ],
            scratch_shapes=[pltpu.VMEM((Hp + 2, Wp + 2, Cin), jnp.float32)],
        ),
        out_shape=(
            jax.ShapeDtypeStruct((N, M, Cmid), jnp.float32),
            jax.ShapeDtypeStruct((N, 2, Cmid), jnp.float32),
        ),
        compiler_params=_cparams(),
    )(xr, w1p)


def _bnrelu_conv2(y1, ss1, w2p, Hp, Wp, Cout):
    N, M, Cmid = y1.shape
    return pl.pallas_call(
        _bnrelu_conv_stats_kernel,
        grid_spec=pltpu.PrefetchScalarGridSpec(
            num_scalar_prefetch=0,
            grid=(N,),
            in_specs=[
                pl.BlockSpec((1, M, Cmid), lambda n: (n, 0, 0)),
                pl.BlockSpec((2, Cmid), lambda n: (0, 0)),
                pl.BlockSpec((9 * Cmid, Cout), lambda n: (0, 0)),
            ],
            out_specs=[
                pl.BlockSpec((1, M, Cout), lambda n: (n, 0, 0)),
                pl.BlockSpec((1, 2, Cout), lambda n: (n, 0, 0)),
            ],
            scratch_shapes=[pltpu.VMEM((Hp + 2, Wp + 2, Cmid), jnp.float32)],
        ),
        out_shape=(
            jax.ShapeDtypeStruct((N, M, Cout), jnp.float32),
            jax.ShapeDtypeStruct((N, 2, Cout), jnp.float32),
        ),
        compiler_params=_cparams(),
    )(y1, ss1, w2p)


def _bnrelu(y2, ss2):
    N, M, Cout = y2.shape
    return pl.pallas_call(
        _bnrelu_kernel,
        grid_spec=pltpu.PrefetchScalarGridSpec(
            num_scalar_prefetch=0,
            grid=(N,),
            in_specs=[
                pl.BlockSpec((1, M, Cout), lambda n: (n, 0, 0)),
                pl.BlockSpec((2, Cout), lambda n: (0, 0)),
            ],
            out_specs=pl.BlockSpec((1, M, Cout), lambda n: (n, 0, 0)),
        ),
        out_shape=jax.ShapeDtypeStruct((N, M, Cout), jnp.float32),
        compiler_params=_cparams(),
    )(y2, ss2)


def _bn_scale_shift(stats, gamma, beta, count):
    """Reduce per-block [sum, sum_sq] partials -> per-channel [scale, shift]."""
    s = jnp.sum(stats[:, 0, :], axis=0)
    sq = jnp.sum(stats[:, 1, :], axis=0)
    mean = s / count
    var = sq / count - mean * mean            # biased variance (training BN)
    rstd = jax.lax.rsqrt(var + EPS)
    scale = gamma * rstd
    shift = beta - mean * scale
    return jnp.stack([scale, shift], axis=0)  # (2, C)


@jax.jit
def downsampling_forward(x_nchw, params):
    """DownSampling.forward: MaxPool2d(2) -> (Conv3x3 + BN + ReLU) x 2."""
    N, Cin, H, W = x_nchw.shape
    Hp, Wp = H // 2, W // 2
    Cmid = params["w1"].shape[-1]
    Cout = params["w2"].shape[-1]
    M = Hp * Wp

    # NCHW -> NHWC boundary plumbing (drop if the surrounding model is NHWC),
    # then a FREE reshape folding the W pool-pair into the lane axis.
    x = jnp.transpose(x_nchw, (0, 2, 3, 1))
    xr = x.reshape(N, H, W // 2, 2 * Cin)

    # Pack weights so each conv is one K = 9*Cin matmul.  Conv biases are
    # intentionally not used: batch-stat BN cancels them exactly.
    w1p = params["w1"].reshape(9 * Cin, Cmid)
    w2p = params["w2"].reshape(9 * Cmid, Cout)

    y1, st1 = _pool_conv1(xr, w1p, Cmid)
    ss1 = _bn_scale_shift(st1, params["g1"], params["beta1"], N * M)
    y2, st2 = _bnrelu_conv2(y1, ss1, w2p, Hp, Wp, Cout)
    ss2 = _bn_scale_shift(st2, params["g2"], params["beta2"], N * M)
    out = _bnrelu(y2, ss2)

    out = out.reshape(N, Hp, Wp, Cout)
    return jnp.transpose(out, (0, 3, 1, 2))   # NHWC -> NCHW


# ---------------------------------------------------------------------------
# Pure-JAX reference (includes the conv bias; verifies it cancels under BN)
# ---------------------------------------------------------------------------
def _reference(x_nchw, params):
    x = jnp.transpose(x_nchw, (0, 2, 3, 1))
    N, H, W, C = x.shape
    x = x.reshape(N, H // 2, 2, W // 2, 2, C).max(axis=(2, 4))

    def block(x, w, b, g, beta):
        y = jax.lax.conv_general_dilated(
            x, w, window_strides=(1, 1), padding="SAME",
            dimension_numbers=("NHWC", "HWIO", "NHWC")) + b
        mean = jnp.mean(y, axis=(0, 1, 2), keepdims=True)
        var = jnp.mean((y - mean) ** 2, axis=(0, 1, 2), keepdims=True)
        return jnp.maximum(g * (y - mean) * jax.lax.rsqrt(var + EPS) + beta, 0.0)

    x = block(x, params["w1"], params["b1"], params["g1"], params["beta1"])
    x = block(x, params["w2"], params["b2"], params["g2"], params["beta2"])
    return jnp.transpose(x, (0, 3, 1, 2))


# ---------------------------------------------------------------------------
def init_params(key, in_channels, out_channels):
    mid_channels = out_channels  # DoubleConv default
    k1, k2, k3, k4 = jax.random.split(key, 4)
    s1 = 1.0 / jnp.sqrt(in_channels * 9.0)
    s2 = 1.0 / jnp.sqrt(mid_channels * 9.0)
    return {
        # weights stored HWIO = (3, 3, Cin, Cout)
        "w1": jax.random.uniform(k1, (3, 3, in_channels, mid_channels),
                                 jnp.float32, -s1, s1),
        "b1": jax.random.uniform(k2, (mid_channels,), jnp.float32, -s1, s1),
        "g1": jnp.ones((mid_channels,), jnp.float32),
        "beta1": jnp.zeros((mid_channels,), jnp.float32),
        "w2": jax.random.uniform(k3, (3, 3, mid_channels, out_channels),
                                 jnp.float32, -s2, s2),
        "b2": jax.random.uniform(k4, (out_channels,), jnp.float32, -s2, s2),
        "g2": jnp.ones((out_channels,), jnp.float32),
        "beta2": jnp.zeros((out_channels,), jnp.float32),
    }


if __name__ == "__main__":
    key = jax.random.PRNGKey(0)
    kx, kp = jax.random.split(key)

    in_channels, out_channels = 4, 8
    x = jax.random.normal(kx, (2, in_channels, 16, 16), jnp.float32)  # NCHW
    params = init_params(kp, in_channels, out_channels)

    out = downsampling_forward(x, params)
    out = jax.block_until_ready(out)

    assert out.shape == (2, out_channels, 8, 8), out.shape

    ref = jax.block_until_ready(_reference(x, params))
    assert jnp.allclose(out, ref, rtol=2e-3, atol=2e-3), \
        float(jnp.max(jnp.abs(out - ref)))

    print("KERNEL_OK")
</pallas_src>

<mosaic_0001>
module attributes {stable_mosaic.version = 11 : i64} {
  func.func @_pool_conv_stats_kernel(%arg0: i32, %arg1: memref<1x16x8x8xf32, #tpu.memory_space<vmem>>, %arg2: memref<36x8xf32, #tpu.memory_space<vmem>>, %arg3: memref<1x64x8xf32, #tpu.memory_space<vmem>>, %arg4: memref<1x2x8xf32, #tpu.memory_space<vmem>>, %arg5: memref<10x10x4xf32, #tpu.memory_space<vmem>>) attributes {dimension_semantics = [#tpu.dimension_semantics<parallel>], iteration_bounds = array<i64: 2>, scalar_prefetch = 0 : i64, scratch_operands = 1 : i64, tpu.core_type = #tpu.core_type<tc>, window_params = [{transform_indices = @transform_0, window_bounds = array<i64: 1, 16, 8, 8>}, {pipeline_mode = #tpu.pipeline_mode<synchronous>, transform_indices = @transform_1, window_bounds = array<i64: 36, 8>}, {transform_indices = @transform_2, window_bounds = array<i64: 1, 64, 8>}, {transform_indices = @transform_3, window_bounds = array<i64: 1, 2, 8>}]} {
    %c0 = arith.constant 0 : index
    %c0_0 = arith.constant 0 : index
    %c0_1 = arith.constant 0 : index
    %c0_2 = arith.constant 0 : index
    %0 = vector.load %arg1[%c0, %c0_0, %c0_1, %c0_2] : memref<1x16x8x8xf32, #tpu.memory_space<vmem>>, vector<1x16x8x8xf32>
    %1 = vector.shape_cast %0 : vector<1x16x8x8xf32> to vector<16x8x8xf32>
    %2 = vector.extract_strided_slice %1 {offsets = [0, 0, 0], sizes = [16, 8, 4], strides = [1, 1, 1]} : vector<16x8x8xf32> to vector<16x8x4xf32>
    %3 = vector.extract_strided_slice %1 {offsets = [0, 0, 4], sizes = [16, 8, 4], strides = [1, 1, 1]} : vector<16x8x8xf32> to vector<16x8x4xf32>
    %4 = arith.maximumf %2, %3 : vector<16x8x4xf32>
    %5 = vector.shape_cast %4 : vector<16x8x4xf32> to vector<8x2x8x4xf32>
    %cst = arith.constant dense<0xFF800000> : vector<8x8x4xf32>
    %6 = vector.multi_reduction <maximumf>, %5, %cst [1] : vector<8x2x8x4xf32> to vector<8x8x4xf32>
    %cst_3 = arith.constant 0.000000e+00 : f32
    %7 = vector.broadcast %cst_3 : f32 to vector<10x10x4xf32>
    %c0_4 = arith.constant 0 : index
    %c0_5 = arith.constant 0 : index
    %c0_6 = arith.constant 0 : index
    %8 = vector.load %arg5[%c0_4, %c0_5, %c0_6] : memref<10x10x4xf32, #tpu.memory_space<vmem>>, vector<10x10x4xf32>
    tpu.vector_store %arg5[%c0_4, %c0_5, %c0_6], %7 {strides = array<i32>} : memref<10x10x4xf32, #tpu.memory_space<vmem>>, vector<10x10x4xf32>,
    %c1 = arith.constant 1 : index
    %c1_7 = arith.constant 1 : index
    %c0_8 = arith.constant 0 : index
    %9 = vector.load %arg5[%c1, %c1_7, %c0_8] : memref<10x10x4xf32, #tpu.memory_space<vmem>>, vector<8x8x4xf32>
    tpu.vector_store %arg5[%c1, %c1_7, %c0_8], %6 {strides = array<i32>} : memref<10x10x4xf32, #tpu.memory_space<vmem>>, vector<8x8x4xf32>,
    %c0_9 = arith.constant 0 : index
    %c0_10 = arith.constant 0 : index
    %c0_11 = arith.constant 0 : index
    %10 = vector.load %arg5[%c0_9, %c0_10, %c0_11] : memref<10x10x4xf32, #tpu.memory_space<vmem>>, vector<8x8x4xf32>
    %c0_12 = arith.constant 0 : index
    %c1_13 = arith.constant 1 : index
    %c0_14 = arith.constant 0 : index
    %11 = vector.load %arg5[%c0_12, %c1_13, %c0_14] : memref<10x10x4xf32, #tpu.memory_space<vmem>>, vector<8x8x4xf32>
    %c0_15 = arith.constant 0 : index
    %c2 = arith.constant 2 : index
    %c0_16 = arith.constant 0 : index
    %12 = vector.load %arg5[%c0_15, %c2, %c0_16] : memref<10x10x4xf32, #tpu.memory_space<vmem>>, vector<8x8x4xf32>
    %c1_17 = arith.constant 1 : index
    %c0_18 = arith.constant 0 : index
    %c0_19 = arith.constant 0 : index
    %13 = vector.load %arg5[%c1_17, %c0_18, %c0_19] : memref<10x10x4xf32, #tpu.memory_space<vmem>>, vector<8x8x4xf32>
    %c1_20 = arith.constant 1 : index
    %c1_21 = arith.constant 1 : index
    %c0_22 = arith.constant 0 : index
    %14 = vector.load %arg5[%c1_20, %c1_21, %c0_22] : memref<10x10x4xf32, #tpu.memory_space<vmem>>, vector<8x8x4xf32>
    %c1_23 = arith.constant 1 : index
    %c2_24 = arith.constant 2 : index
    %c0_25 = arith.constant 0 : index
    %15 = vector.load %arg5[%c1_23, %c2_24, %c0_25] : memref<10x10x4xf32, #tpu.memory_space<vmem>>, vector<8x8x4xf32>
    %c2_26 = arith.constant 2 : index
    %c0_27 = arith.constant 0 : index
    %c0_28 = arith.constant 0 : index
    %16 = vector.load %arg5[%c2_26, %c0_27, %c0_28] : memref<10x10x4xf32, #tpu.memory_space<vmem>>, vector<8x8x4xf32>
    %c2_29 = arith.constant 2 : index
    %c1_30 = arith.constant 1 : index
    %c0_31 = arith.constant 0 : index
    %17 = vector.load %arg5[%c2_29, %c1_30, %c0_31] : memref<10x10x4xf32, #tpu.memory_space<vmem>>, vector<8x8x4xf32>
    %c2_32 = arith.constant 2 : index
    %c2_33 = arith.constant 2 : index
    %c0_34 = arith.constant 0 : index
    %18 = vector.load %arg5[%c2_32, %c2_33, %c0_34] : memref<10x10x4xf32, #tpu.memory_space<vmem>>, vector<8x8x4xf32>
    %19 = tpu.concatenate %10, %11, %12, %13, %14, %15, %16, %17, %18 in 2 : vector<8x8x4xf32>, vector<8x8x4xf32>, vector<8x8x4xf32>, vector<8x8x4xf32>, vector<8x8x4xf32>, vector<8x8x4xf32>, vector<8x8x4xf32>, vector<8x8x4xf32>, vector<8x8x4xf32> -> vector<8x8x36xf32>
    %20 = vector.shape_cast %19 : vector<8x8x36xf32> to vector<64x36xf32>
    %c0_35 = arith.constant 0 : index
    %c0_36 = arith.constant 0 : index
    %21 = vector.load %arg2[%c0_35, %c0_36] : memref<36x8xf32, #tpu.memory_space<vmem>>, vector<36x8xf32>
    %cst_37 = arith.constant dense<0.000000e+00> : vector<64x8xf32>
    %22 = tpu.matmul %20, %21, %cst_37 {dimension_numbers = #tpu.dot_dimension_numbers<[1], [0], [0], [1], [0, 0, 1, 1], [], []>} : vector<64x36xf32>, vector<36x8xf32>, vector<64x8xf32> -> vector<64x8xf32>
    %23 = vector.shape_cast %22 : vector<64x8xf32> to vector<1x64x8xf32>
    %c0_38 = arith.constant 0 : index
    %c0_39 = arith.constant 0 : index
    %c0_40 = arith.constant 0 : index
    %24 = vector.load %arg3[%c0_38, %c0_39, %c0_40] : memref<1x64x8xf32, #tpu.memory_space<vmem>>, vector<1x64x8xf32>
    tpu.vector_store %arg3[%c0_38, %c0_39, %c0_40], %23 {strides = array<i32>} : memref<1x64x8xf32, #tpu.memory_space<vmem>>, vector<1x64x8xf32>,
    %cst_41 = arith.constant dense<0.000000e+00> : vector<8xf32>
    %25 = vector.multi_reduction <add>, %22, %cst_41 [0] : vector<64x8xf32> to vector<8xf32>
    %26 = vector.shape_cast %25 : vector<8xf32> to vector<1x8xf32>
    %27 = arith.mulf %22, %22 : vector<64x8xf32>
    %cst_42 = arith.constant dense<0.000000e+00> : vector<8xf32>
    %28 = vector.multi_reduction <add>, %27, %cst_42 [0] : vector<64x8xf32> to vector<8xf32>
    %29 = vector.shape_cast %28 : vector<8xf32> to vector<1x8xf32>
    %30 = tpu.concatenate %26, %29 in 0 : vector<1x8xf32>, vector<1x8xf32> -> vector<2x8xf32>
    %31 = vector.shape_cast %30 : vector<2x8xf32> to vector<1x2x8xf32>
    %c0_43 = arith.constant 0 : index
    %c0_44 = arith.constant 0 : index
    %c0_45 = arith.constant 0 : index
    %32 = vector.load %arg4[%c0_43, %c0_44, %c0_45] : memref<1x2x8xf32, #tpu.memory_space<vmem>>, vector<1x2x8xf32>
    tpu.vector_store %arg4[%c0_43, %c0_44, %c0_45], %31 {strides = array<i32>} : memref<1x2x8xf32, #tpu.memory_space<vmem>>, vector<1x2x8xf32>,
    return
  }
  func.func @transform_0(%arg0: i32) -> (i32, i32, i32, i32) {
    %c0_i32 = arith.constant 0 : i32
    %c0_i32_0 = arith.constant 0 : i32
    %c0_i32_1 = arith.constant 0 : i32
    %c0_i32_2 = arith.constant 0 : i32
    return %arg0, %c0_i32, %c0_i32_0, %c0_i32_1 : i32, i32, i32, i32
  }
  func.func @transform_1(%arg0: i32) -> (i32, i32) {
    %c0_i32 = arith.constant 0 : i32
    %c0_i32_0 = arith.constant 0 : i32
    %c0_i32_1 = arith.constant 0 : i32
    return %c0_i32, %c0_i32_0 : i32, i32
  }
  func.func @transform_2(%arg0: i32) -> (i32, i32, i32) {
    %c0_i32 = arith.constant 0 : i32
    %c0_i32_0 = arith.constant 0 : i32
    %c0_i32_1 = arith.constant 0 : i32
    return %arg0, %c0_i32, %c0_i32_0 : i32, i32, i32
  }
  func.func @transform_3(%arg0: i32) -> (i32, i32, i32) {
    %c0_i32 = arith.constant 0 : i32
    %c0_i32_0 = arith.constant 0 : i32
    %c0_i32_1 = arith.constant 0 : i32
    return %arg0, %c0_i32, %c0_i32_0 : i32, i32, i32
  }
}

module attributes {stable_mosaic.version = 11 : i64} {
  func.func @_bnrelu_conv_stats_kernel(%arg0: i32, %arg1: memref<1x64x8xf32, #tpu.memory_space<vmem>>, %arg2: memref<2x8xf32, #tpu.memory_space<vmem>>, %arg3: memref<72x8xf32, #tpu.memory_space<vmem>>, %arg4: memref<1x64x8xf32, #tpu.memory_space<vmem>>, %arg5: memref<1x2x8xf32, #tpu.memory_space<vmem>>, %arg6: memref<10x10x8xf32, #tpu.memory_space<vmem>>) attributes {dimension_semantics = [#tpu.dimension_semantics<parallel>], iteration_bounds = array<i64: 2>, scalar_prefetch = 0 : i64, scratch_operands = 1 : i64, tpu.core_type = #tpu.core_type<tc>, window_params = [{transform_indices = @transform_0, window_bounds = array<i64: 1, 64, 8>}, {pipeline_mode = #tpu.pipeline_mode<synchronous>, transform_indices = @transform_1, window_bounds = array<i64: 2, 8>}, {pipeline_mode = #tpu.pipeline_mode<synchronous>, transform_indices = @transform_2, window_bounds = array<i64: 72, 8>}, {transform_indices = @transform_3, window_bounds = array<i64: 1, 64, 8>}, {transform_indices = @transform_4, window_bounds = array<i64: 1, 2, 8>}]} {
    %c0 = arith.constant 0 : index
    %c0_0 = arith.constant 0 : index
    %c0_1 = arith.constant 0 : index
    %0 = vector.load %arg1[%c0, %c0_0, %c0_1] : memref<1x64x8xf32, #tpu.memory_space<vmem>>, vector<1x64x8xf32>
    %1 = vector.shape_cast %0 : vector<1x64x8xf32> to vector<64x8xf32>
    %c0_2 = arith.constant 0 : index
    %c0_3 = arith.constant 0 : index
    %2 = vector.load %arg2[%c0_2, %c0_3] : memref<2x8xf32, #tpu.memory_space<vmem>>, vector<1x8xf32>
    %3 = vector.broadcast %2 : vector<1x8xf32> to vector<64x8xf32>
    %4 = arith.mulf %1, %3 : vector<64x8xf32>
    %c1 = arith.constant 1 : index
    %c0_4 = arith.constant 0 : index
    %5 = vector.load %arg2[%c1, %c0_4] : memref<2x8xf32, #tpu.memory_space<vmem>>, vector<1x8xf32>
    %6 = vector.broadcast %5 : vector<1x8xf32> to vector<64x8xf32>
    %7 = arith.addf %4, %6 : vector<64x8xf32>
    %cst = arith.constant 0.000000e+00 : f32
    %8 = vector.broadcast %cst : f32 to vector<64x8xf32>
    %9 = arith.maximumf %7, %8 : vector<64x8xf32>
    %cst_5 = arith.constant 0.000000e+00 : f32
    %10 = vector.broadcast %cst_5 : f32 to vector<10x10x8xf32>
    %c0_6 = arith.constant 0 : index
    %c0_7 = arith.constant 0 : index
    %c0_8 = arith.constant 0 : index
    %11 = vector.load %arg6[%c0_6, %c0_7, %c0_8] : memref<10x10x8xf32, #tpu.memory_space<vmem>>, vector<10x10x8xf32>
    tpu.vector_store %arg6[%c0_6, %c0_7, %c0_8], %10 {strides = array<i32>} : memref<10x10x8xf32, #tpu.memory_space<vmem>>, vector<10x10x8xf32>,
    %12 = vector.shape_cast %9 : vector<64x8xf32> to vector<8x8x8xf32>
    %c1_9 = arith.constant 1 : index
    %c1_10 = arith.constant 1 : index
    %c0_11 = arith.constant 0 : index
    %13 = vector.load %arg6[%c1_9, %c1_10, %c0_11] : memref<10x10x8xf32, #tpu.memory_space<vmem>>, vector<8x8x8xf32>
    tpu.vector_store %arg6[%c1_9, %c1_10, %c0_11], %12 {strides = array<i32>} : memref<10x10x8xf32, #tpu.memory_space<vmem>>, vector<8x8x8xf32>,
    %c0_12 = arith.constant 0 : index
    %c0_13 = arith.constant 0 : index
    %c0_14 = arith.constant 0 : index
    %14 = vector.load %arg6[%c0_12, %c0_13, %c0_14] : memref<10x10x8xf32, #tpu.memory_space<vmem>>, vector<8x8x8xf32>
    %c0_15 = arith.constant 0 : index
    %c1_16 = arith.constant 1 : index
    %c0_17 = arith.constant 0 : index
    %15 = vector.load %arg6[%c0_15, %c1_16, %c0_17] : memref<10x10x8xf32, #tpu.memory_space<vmem>>, vector<8x8x8xf32>
    %c0_18 = arith.constant 0 : index
    %c2 = arith.constant 2 : index
    %c0_19 = arith.constant 0 : index
    %16 = vector.load %arg6[%c0_18, %c2, %c0_19] : memref<10x10x8xf32, #tpu.memory_space<vmem>>, vector<8x8x8xf32>
    %c1_20 = arith.constant 1 : index
    %c0_21 = arith.constant 0 : index
    %c0_22 = arith.constant 0 : index
    %17 = vector.load %arg6[%c1_20, %c0_21, %c0_22] : memref<10x10x8xf32, #tpu.memory_space<vmem>>, vector<8x8x8xf32>
    %c1_23 = arith.constant 1 : index
    %c1_24 = arith.constant 1 : index
    %c0_25 = arith.constant 0 : index
    %18 = vector.load %arg6[%c1_23, %c1_24, %c0_25] : memref<10x10x8xf32, #tpu.memory_space<vmem>>, vector<8x8x8xf32>
    %c1_26 = arith.constant 1 : index
    %c2_27 = arith.constant 2 : index
    %c0_28 = arith.constant 0 : index
    %19 = vector.load %arg6[%c1_26, %c2_27, %c0_28] : memref<10x10x8xf32, #tpu.memory_space<vmem>>, vector<8x8x8xf32>
    %c2_29 = arith.constant 2 : index
    %c0_30 = arith.constant 0 : index
    %c0_31 = arith.constant 0 : index
    %20 = vector.load %arg6[%c2_29, %c0_30, %c0_31] : memref<10x10x8xf32, #tpu.memory_space<vmem>>, vector<8x8x8xf32>
    %c2_32 = arith.constant 2 : index
    %c1_33 = arith.constant 1 : index
    %c0_34 = arith.constant 0 : index
    %21 = vector.load %arg6[%c2_32, %c1_33, %c0_34] : memref<10x10x8xf32, #tpu.memory_space<vmem>>, vector<8x8x8xf32>
    %c2_35 = arith.constant 2 : index
    %c2_36 = arith.constant 2 : index
    %c0_37 = arith.constant 0 : index
    %22 = vector.load %arg6[%c2_35, %c2_36, %c0_37] : memref<10x10x8xf32, #tpu.memory_space<vmem>>, vector<8x8x8xf32>
    %23 = tpu.concatenate %14, %15, %16, %17, %18, %19, %20, %21, %22 in 2 : vector<8x8x8xf32>, vector<8x8x8xf32>, vector<8x8x8xf32>, vector<8x8x8xf32>, vector<8x8x8xf32>, vector<8x8x8xf32>, vector<8x8x8xf32>, vector<8x8x8xf32>, vector<8x8x8xf32> -> vector<8x8x72xf32>
    %24 = vector.shape_cast %23 : vector<8x8x72xf32> to vector<64x72xf32>
    %c0_38 = arith.constant 0 : index
    %c0_39 = arith.constant 0 : index
    %25 = vector.load %arg3[%c0_38, %c0_39] : memref<72x8xf32, #tpu.memory_space<vmem>>, vector<72x8xf32>
    %cst_40 = arith.constant dense<0.000000e+00> : vector<64x8xf32>
    %26 = tpu.matmul %24, %25, %cst_40 {dimension_numbers = #tpu.dot_dimension_numbers<[1], [0], [0], [1], [0, 0, 1, 1], [], []>} : vector<64x72xf32>, vector<72x8xf32>, vector<64x8xf32> -> vector<64x8xf32>
    %27 = vector.shape_cast %26 : vector<64x8xf32> to vector<1x64x8xf32>
    %c0_41 = arith.constant 0 : index
    %c0_42 = arith.constant 0 : index
    %c0_43 = arith.constant 0 : index
    %28 = vector.load %arg4[%c0_41, %c0_42, %c0_43] : memref<1x64x8xf32, #tpu.memory_space<vmem>>, vector<1x64x8xf32>
    tpu.vector_store %arg4[%c0_41, %c0_42, %c0_43], %27 {strides = array<i32>} : memref<1x64x8xf32, #tpu.memory_space<vmem>>, vector<1x64x8xf32>,
    %cst_44 = arith.constant dense<0.000000e+00> : vector<8xf32>
    %29 = vector.multi_reduction <add>, %26, %cst_44 [0] : vector<64x8xf32> to vector<8xf32>
    %30 = vector.shape_cast %29 : vector<8xf32> to vector<1x8xf32>
    %31 = arith.mulf %26, %26 : vector<64x8xf32>
    %cst_45 = arith.constant dense<0.000000e+00> : vector<8xf32>
    %32 = vector.multi_reduction <add>, %31, %cst_45 [0] : vector<64x8xf32> to vector<8xf32>
    %33 = vector.shape_cast %32 : vector<8xf32> to vector<1x8xf32>
    %34 = tpu.concatenate %30, %33 in 0 : vector<1x8xf32>, vector<1x8xf32> -> vector<2x8xf32>
    %35 = vector.shape_cast %34 : vector<2x8xf32> to vector<1x2x8xf32>
    %c0_46 = arith.constant 0 : index
    %c0_47 = arith.constant 0 : index
    %c0_48 = arith.constant 0 : index
    %36 = vector.load %arg5[%c0_46, %c0_47, %c0_48] : memref<1x2x8xf32, #tpu.memory_space<vmem>>, vector<1x2x8xf32>
    tpu.vector_store %arg5[%c0_46, %c0_47, %c0_48], %35 {strides = array<i32>} : memref<1x2x8xf32, #tpu.memory_space<vmem>>, vector<1x2x8xf32>,
    return
  }
  func.func @transform_0(%arg0: i32) -> (i32, i32, i32) {
    %c0_i32 = arith.constant 0 : i32
    %c0_i32_0 = arith.constant 0 : i32
    %c0_i32_1 = arith.constant 0 : i32
    return %arg0, %c0_i32, %c0_i32_0 : i32, i32, i32
  }
  func.func @transform_1(%arg0: i32) -> (i32, i32) {
    %c0_i32 = arith.constant 0 : i32
    %c0_i32_0 = arith.constant 0 : i32
    %c0_i32_1 = arith.constant 0 : i32
    return %c0_i32, %c0_i32_0 : i32, i32
  }
  func.func @transform_2(%arg0: i32) -> (i32, i32) {
    %c0_i32 = arith.constant 0 : i32
    %c0_i32_0 = arith.constant 0 : i32
    %c0_i32_1 = arith.constant 0 : i32
    return %c0_i32, %c0_i32_0 : i32, i32
  }
  func.func @transform_3(%arg0: i32) -> (i32, i32, i32) {
    %c0_i32 = arith.constant 0 : i32
    %c0_i32_0 = arith.constant 0 : i32
    %c0_i32_1 = arith.constant 0 : i32
    return %arg0, %c0_i32, %c0_i32_0 : i32, i32, i32
  }
  func.func @transform_4(%arg0: i32) -> (i32, i32, i32) {
    %c0_i32 = arith.constant 0 : i32
    %c0_i32_0 = arith.constant 0 : i32
    %c0_i32_1 = arith.constant 0 : i32
    return %arg0, %c0_i32, %c0_i32_0 : i32, i32, i32
  }
}

module attributes {stable_mosaic.version = 11 : i64} {
  func.func @_bnrelu_kernel(%arg0: i32, %arg1: memref<1x64x8xf32, #tpu.memory_space<vmem>>, %arg2: memref<2x8xf32, #tpu.memory_space<vmem>>, %arg3: memref<1x64x8xf32, #tpu.memory_space<vmem>>) attributes {dimension_semantics = [#tpu.dimension_semantics<parallel>], iteration_bounds = array<i64: 2>, scalar_prefetch = 0 : i64, scratch_operands = 0 : i64, tpu.core_type = #tpu.core_type<tc>, window_params = [{transform_indices = @transform_0, window_bounds = array<i64: 1, 64, 8>}, {pipeline_mode = #tpu.pipeline_mode<synchronous>, transform_indices = @transform_1, window_bounds = array<i64: 2, 8>}, {transform_indices = @transform_2, window_bounds = array<i64: 1, 64, 8>}]} {
    %c0 = arith.constant 0 : index
    %c0_0 = arith.constant 0 : index
    %c0_1 = arith.constant 0 : index
    %0 = vector.load %arg1[%c0, %c0_0, %c0_1] : memref<1x64x8xf32, #tpu.memory_space<vmem>>, vector<1x64x8xf32>
    %1 = vector.shape_cast %0 : vector<1x64x8xf32> to vector<64x8xf32>
    %c0_2 = arith.constant 0 : index
    %c0_3 = arith.constant 0 : index
    %2 = vector.load %arg2[%c0_2, %c0_3] : memref<2x8xf32, #tpu.memory_space<vmem>>, vector<1x8xf32>
    %3 = vector.broadcast %2 : vector<1x8xf32> to vector<64x8xf32>
    %4 = arith.mulf %1, %3 : vector<64x8xf32>
    %c1 = arith.constant 1 : index
    %c0_4 = arith.constant 0 : index
    %5 = vector.load %arg2[%c1, %c0_4] : memref<2x8xf32, #tpu.memory_space<vmem>>, vector<1x8xf32>
    %6 = vector.broadcast %5 : vector<1x8xf32> to vector<64x8xf32>
    %7 = arith.addf %4, %6 : vector<64x8xf32>
    %cst = arith.constant 0.000000e+00 : f32
    %8 = vector.broadcast %cst : f32 to vector<64x8xf32>
    %9 = arith.maximumf %7, %8 : vector<64x8xf32>
    %10 = vector.shape_cast %9 : vector<64x8xf32> to vector<1x64x8xf32>
    %c0_5 = arith.constant 0 : index
    %c0_6 = arith.constant 0 : index
    %c0_7 = arith.constant 0 : index
    %11 = vector.load %arg3[%c0_5, %c0_6, %c0_7] : memref<1x64x8xf32, #tpu.memory_space<vmem>>, vector<1x64x8xf32>
    tpu.vector_store %arg3[%c0_5, %c0_6, %c0_7], %10 {strides = array<i32>} : memref<1x64x8xf32, #tpu.memory_space<vmem>>, vector<1x64x8xf32>,
    return
  }
  func.func @transform_0(%arg0: i32) -> (i32, i32, i32) {
    %c0_i32 = arith.constant 0 : i32
    %c0_i32_0 = arith.constant 0 : i32
    %c0_i32_1 = arith.constant 0 : i32
    return %arg0, %c0_i32, %c0_i32_0 : i32, i32, i32
  }
  func.func @transform_1(%arg0: i32) -> (i32, i32) {
    %c0_i32 = arith.constant 0 : i32
    %c0_i32_0 = arith.constant 0 : i32
    %c0_i32_1 = arith.constant 0 : i32
    return %c0_i32, %c0_i32_0 : i32, i32
  }
  func.func @transform_2(%arg0: i32) -> (i32, i32, i32) {
    %c0_i32 = arith.constant 0 : i32
    %c0_i32_0 = arith.constant 0 : i32
    %c0_i32_1 = arith.constant 0 : i32
    return %arg0, %c0_i32, %c0_i32_0 : i32, i32, i32
  }
}

</mosaic_0001>

<bundles_post_ra>
// kernel: downsampling_forward.5
= control target key start
LH: loop header
LB: loop body
LE: loop exit
PB: predicated region body
PF: predicated region fallthrough
CT: control target
= control target key end

     0   :  { %s296_s9 = smov 0   ;;  %s327_s0 = inlined_call_operand.vmem [shape: f32[2,64,8], index: 0, kind: input, shape index: {}]   ;;  %s328_s1 = inlined_call_operand.vmem [shape: f32[2,8], index: 1, kind: input, shape index: {}]   ;;  %s329_s2 = inlined_call_operand.vmem [shape: f32[2,64,8], index: 2, kind: output, shape index: {}]  }
   0x1 LB: > { %s250_s10 = sadd.s32 4294967295, %s279_s9   ;;  %p254_p0 = scmp.ge.s32.totalorder %s279_s9, 1  ;;  %s279_s9 = sphi %s296_s9, %s12_s9  }
   0x2   : > { %p112_p1 = scmp.lt.s32.totalorder %s279_s9, 3 }
   0x4   : > { %p113_p2 = pnand %p254_p0, %p112_p1 }
   0x5   : > { %p134_p3 = scmp.lt.s32.totalorder (!%p113_p2), %s250_s10, 1 }
   0x6   : > { %116 = sbr.rel (%p113_p2) target bundleno = 25 (0x19), region = 28 }
   0xb   : > { %s331_s10 = smov (!%p134_p3, %s250_s10), 1  ;;  %v259_v0 = vld [vmem:[%s328_s1] ss:$0 sm:$0xff]  ;;  %v260_v1 = vld [vmem:[%s328_s1 + $0x1] ss:$0 sm:$0xff]  ;;  %vm186_vm0 = vcmask 64512  }
   0xc   : > { %s263_s11 = sshll.u32 %s331_s10, 6 }
   0xd   : > { %s138_s16 = scalar_lea.vmem %s327_s0, %s263_s11  ;;  %s143_s21 = scalar_lea.vmem %s329_s2, %s263_s11 }
   0xe   : > { %v144_v2 = vld [vmem:[%s138_s16] sm:$0xff]  ;;  %v145_v3 = vld [vmem:[%s138_s16 + $0x8] sm:$0xff]  ;;  %v146_v4 = vld [vmem:[%s138_s16 + $0x10] sm:$0xff] }
   0xf   : > { %v157_v5 = vmul.f32 %v259_v0, %v144_v2  ;;  %v158_v6 = vmul.f32 %v259_v0, %v145_v3  ;;  %v159_v7 = vmul.f32 %v259_v0, %v146_v4  ;;  %v147_v8 = vld [vmem:[%s138_s16 + $0x18] sm:$0xff]  ;;  %v148_v9 = vld [vmem:[%s138_s16 + $0x20] sm:$0xff]  ;;  %v149_v10 = vld [vmem:[%s138_s16 + $0x28] sm:$0xff] }
  0x10   : > { %v160_v11 = vmul.f32 %v259_v0, %v147_v8  ;;  %v161_v12 = vmul.f32 %v259_v0, %v148_v9  ;;  %v162_v13 = vmul.f32 %v259_v0, %v149_v10  ;;  %v150_v14 = vld [vmem:[%s138_s16 + $0x30] sm:$0xff]  ;;  %v151_v15 = vld [vmem:[%s138_s16 + $0x38] sm:$0xff] }
  0x11   : > { %v170_v16 = vadd.f32 %v260_v1, %v157_v5  ;;  %v171_v17 = vadd.f32 %v260_v1, %v158_v6  ;;  %v172_v18 = vadd.f32 %v260_v1, %v159_v7  ;;  %v163_v19 = vmul.f32 %v259_v0, %v150_v14 }
  0x12   : > { %v173_v20 = vadd.f32 %v260_v1, %v160_v11  ;;  %v174_v21 = vadd.f32 %v260_v1, %v161_v12  ;;  %v175_v22 = vadd.f32 %v260_v1, %v162_v13  ;;  %v164_v23 = vmul.f32 %v259_v0, %v151_v15 }
  0x13   : > { %v178_v24 = vmax.f32 %v170_v16, 0.0  ;;  %v179_v25 = vmax.f32 %v171_v17, 0.0  ;;  %v180_v26 = vmax.f32 %v172_v18, 0.0  ;;  %v176_v27 = vadd.f32 %v260_v1, %v163_v19 }
  0x14   : > { %v181_v28 = vmax.f32 %v173_v20, 0.0  ;;  %v182_v29 = vmax.f32 %v174_v21, 0.0  ;;  %v183_v30 = vmax.f32 %v175_v22, 0.0  ;;  %v177_v31 = vadd.f32 %v260_v1, %v164_v23 }
  0x15   : > { %187 = vst.msk [vmem:[%s143_s21] sm:$0xff] %vm186_vm0, %v178_v24  ;;  %188 = vst.msk [vmem:[%s143_s21 + $0x8] sm:$0xff] %vm186_vm0, %v179_v25  ;;  %v184_v32 = vmax.f32 %v176_v27, 0.0 }
  0x16   : > { %189 = vst.msk [vmem:[%s143_s21 + $0x10] sm:$0xff] %vm186_vm0, %v180_v26  ;;  %190 = vst.msk [vmem:[%s143_s21 + $0x18] sm:$0xff] %vm186_vm0, %v181_v28  ;;  %v185_v33 = vmax.f32 %v177_v31, 0.0 }
  0x17   : > { %191 = vst.msk [vmem:[%s143_s21 + $0x20] sm:$0xff] %vm186_vm0, %v182_v29  ;;  %192 = vst.msk [vmem:[%s143_s21 + $0x28] sm:$0xff] %vm186_vm0, %v183_v30 }
  0x18   : > { %193 = vst.msk [vmem:[%s143_s21 + $0x30] sm:$0xff] %vm186_vm0, %v184_v32  ;;  %194 = vst.msk [vmem:[%s143_s21 + $0x38] sm:$0xff] %vm186_vm0, %v185_v33 }
  0x19 PF: > { %s12_s9 = sadd.s32 1, %s279_s9  }
  0x1a   : > { %p9_p4 = scmp.ge.s32.totalorder %s12_s9, 4  }
  0x1c   :  { %11 = sbr.rel (!%p9_p4) target bundleno = 1 (0x1), region = 58 }

// kernel: downsampling_forward.4
= control target key start
LH: loop header
LB: loop body
LE: loop exit
PB: predicated region body
PF: predicated region fallthrough
CT: control target
= control target key end

     0   :  { %s1116_s15 = smov 0   ;;  %s1413_s0 = inlined_call_operand.vmem [shape: f32[2,64,8], index: 0, kind: input, shape index: {}]   ;;  %s1414_s1 = inlined_call_operand.vmem [shape: f32[2,8], index: 1, kind: input, shape index: {}]   ;;  %s1415_s2 = inlined_call_operand.vmem [shape: f32[72,8], index: 2, kind: input, shape index: {}]   ;;  %s1416_s3 = inlined_call_operand.vmem [shape: f32[2,64,8], index: 3, kind: output, shape index: {0}]   ;;  %s1417_s4 = inlined_call_operand.vmem [shape: f32[2,2,8], index: 4, kind: output, shape index: {1}]  }
   0x1 LB: > { %s968_s16 = sadd.s32 4294967295, %s1080_s15   ;;  %p972_p0 = scmp.ge.s32.totalorder %s1080_s15, 1  ;;  %s1080_s15 = sphi %s1116_s15, %s15_s15  }
   0x2   : > { %p165_p1 = scmp.lt.s32.totalorder %s1080_s15, 3 }
   0x4   : > { %p166_p2 = pnand %p972_p0, %p165_p1 }
   0x5   : > { %p195_p3 = scmp.lt.s32.totalorder (!%p166_p2), %s968_s16, 1  ;;  %s1083_s25 = smov (!%p166_p2), 16  }
   0x6   : > { %169 = sbr.rel (%p166_p2) target bundleno = 484 (0x1e4), region = 32  ;;  %s1084_s26 = smov (!%p166_p2), 8  }
   0x7   : > { %s1085_s27 = smov (!%p166_p2), 24   ;;  %s1086_s28 = smov (!%p166_p2), 32  }
   0x8   : > { %s1087_s5 = smov (!%p166_p2), 40   ;;  %s1088_s12 = smov (!%p166_p2), 48  }
   0x9   : > { %s1090_s6 = smov (!%p166_p2), 64  }
   0xb   : > { %vm251_vm0 = vcmask 64512   ;;  %vm253_vm1 = vcmask 58368   ;;  %v1082_v0 = vmov 0.0   ;;  %s1419_s16 = smov (!%p195_p3, %s968_s16), 1  ;;  %v978_v1 = vld [vmem:[%s1414_s1] ss:$0 sm:$0xff] }
   0xc   : > { %252 = vst.msk [vmem:[#allocation2] sm:$0xff] %vm251_vm0, %v1082_v0  ;;  %255 = vst.msk [vmem:[#allocation2 + $0x10] sm:$0xff] %vm251_vm0, %v1082_v0  ;;  %s990_s17 = sshll.u32 %s1419_s16, 6  ;;  %v979_v2 = vld [vmem:[%s1414_s1 + $0x1] ss:$0 sm:$0xff]  ;;  %v689_v45 = vld [vmem:[%s1415_s2 + $0x38] sm:$0xff] }
   0xd   : > { %254 = vst.msk [vmem:[#allocation2 + $0x8] sm:$0x3] %vm253_vm1, %v1082_v0  ;;  %256 = vst.msk [vmem:[#allocation2 + $0x18] sm:$0x3] %vm253_vm1, %v1082_v0  ;;  %s199_s22 = scalar_lea.vmem %s1413_s0, %s990_s17  ;;  %v690_v42 = vld [vmem:[%s1415_s2 + $0x40] sm:$0xff]  ;;  %v688_v46 = vld [vmem:[%s1415_s2 + $0x30] sm:$0xff] }
   0xe   : > { %257 = vst.msk [vmem:[#allocation2 + $0x20] sm:$0xff] %vm251_vm0, %v1082_v0  ;;  %259 = vst.msk [vmem:[#allocation2 + $0x30] sm:$0xff] %vm251_vm0, %v1082_v0  ;;  %v209_v3 = vld [vmem:[%s199_s22] sm:$0xff]  ;;  %v210_v4 = vld [vmem:[%s199_s22 + $0x8] sm:$0xff]  ;;  %1009 = vmatprep.subr.mxu0 %v690_v42  ;;  %1039 = vmatprep.subr.mxu1 %v690_v42  ;;  %vm619_vm2 = vcmask 130048   ;;  %vm628_vm3 = vcmask 195584  }
   0xf   : > { %258 = vst.msk [vmem:[#allocation2 + $0x28] sm:$0x3] %vm253_vm1, %v1082_v0  ;;  %260 = vst.msk [vmem:[#allocation2 + $0x38] sm:$0x3] %vm253_vm1, %v1082_v0  ;;  %v211_v5 = vld [vmem:[%s199_s22 + $0x10] sm:$0xff]  ;;  %v222_v8 = vmul.f32 %v978_v1, %v209_v3  ;;  %v223_v9 = vmul.f32 %v978_v1, %v210_v4  ;;  %v212_v11 = vld [vmem:[%s199_s22 + $0x18] sm:$0xff]  ;;  %1010 = vmatpush3.msra.mxu0 %v690_v42  ;;  %1048 = vmatpush3.msra.mxu1 %v690_v42 }
  0x10   : > { %261 = vst.msk [vmem:[#allocation2 + $0x40] sm:$0xff] %vm251_vm0, %v1082_v0  ;;  %263 = vst.msk [vmem:[#allocation2 + $0x50] sm:$0xff] %vm251_vm0, %v1082_v0  ;;  %v224_v10 = vmul.f32 %v978_v1, %v211_v5  ;;  %v225_v12 = vmul.f32 %v978_v1, %v212_v11  ;;  %v213_v13 = vld [vmem:[%s199_s22 + $0x20] sm:$0xff]  ;;  %v214_v14 = vld [vmem:[%s199_s22 + $0x28] sm:$0xff]  ;;  %1011 = vmatprep.subr.mxu0 %v689_v45  ;;  %1040 = vmatprep.subr.mxu1 %v689_v45  ;;  %vm637_vm4 = vcmask 261120   ;;  %vm646_vm5 = vcmask 326656  }
  0x11   : > { %262 = vst.msk [vmem:[#allocation2 + $0x48] sm:$0x3] %vm253_vm1, %v1082_v0  ;;  %264 = vst.msk [vmem:[#allocation2 + $0x58] sm:$0x3] %vm253_vm1, %v1082_v0  ;;  %v235_v15 = vadd.f32 %v979_v2, %v222_v8  ;;  %v236_v16 = vadd.f32 %v979_v2, %v223_v9  ;;  %v226_v18 = vmul.f32 %v978_v1, %v213_v13  ;;  %v215_v19 = vld [vmem:[%s199_s22 + $0x30] sm:$0xff]  ;;  %v216_v20 = vld [vmem:[%s199_s22 + $0x38] sm:$0xff]  ;;  %1012 = vmatpush3.msra.mxu0 %v689_v45 }
  0x12   : > { %265 = vst.msk [vmem:[#allocation2 + $0x60] sm:$0xff] %vm251_vm0, %v1082_v0  ;;  %267 = vst.msk [vmem:[#allocation2 + $0x70] sm:$0xff] %vm251_vm0, %v1082_v0  ;;  %v237_v17 = vadd.f32 %v979_v2, %v224_v10  ;;  %v238_v21 = vadd.f32 %v979_v2, %v225_v12  ;;  %v227_v22 = vmul.f32 %v978_v1, %v214_v14  ;;  %1049 = vmatpush3.msra.mxu1 %v689_v45  ;;  %v687_v47 = vld [vmem:[%s1415_s2 + $0x28] sm:$0xff]  ;;  %v686_v50 = vld [vmem:[%s1415_s2 + $0x20] sm:$0xff]  ;;  %s1089_s22 = smov 56   ;;  %vm655_vm6 = vcmask 392192  }
  0x13   : > { %266 = vst.msk [vmem:[#allocation2 + $0x68] sm:$0x3] %vm253_vm1, %v1082_v0  ;;  %268 = vst.msk [vmem:[#allocation2 + $0x78] sm:$0x3] %vm253_vm1, %v1082_v0  ;;  %v228_v23 = vmul.f32 %v978_v1, %v215_v19  ;;  %v229_v24 = vmul.f32 %v978_v1, %v216_v20  ;;  %v243_v25 = vmax.f32 %v235_v15, 0.0  ;;  %v244_v26 = vmax.f32 %v236_v16, 0.0  ;;  %1013 = vmatprep.subr.mxu0 %v688_v46 }
  0x14   : > { %269 = vst.msk [vmem:[#allocation2 + $0x80] sm:$0xff] %vm251_vm0, %v1082_v0  ;;  %271 = vst.msk [vmem:[#allocation2 + $0x90] sm:$0xff] %vm251_vm0, %v1082_v0  ;;  %v298_v6 = vld [vmem:[#allocation2 + $0x2] sm:$0xff]  ;;  %v245_v27 = vmax.f32 %v237_v17, 0.0  ;;  %v239_v28 = vadd.f32 %v979_v2, %v226_v18  ;;  %v246_v29 = vmax.f32 %v238_v21, 0.0  ;;  %v240_v30 = vadd.f32 %v979_v2, %v227_v22  ;;  %1041 = vmatprep.subr.mxu1 %v688_v46  ;;  %v685_v51 = vld [vmem:[%s1415_s2 + $0x18] sm:$0xff] }
  0x15   : > { %270 = vst.msk [vmem:[#allocation2 + $0x88] sm:$0x3] %vm253_vm1, %v1082_v0  ;;  %272 = vst.msk [vmem:[#allocation2 + $0x98] sm:$0x3] %vm253_vm1, %v1082_v0  ;;  %v290_v7 = vld [vmem:[#allocation2 + $0x1] sm:$0xff]  ;;  %395 = vrot.lane.b32.xlu1 %v298_v6, %s1083_s25  ;;  %v241_v31 = vadd.f32 %v979_v2, %v228_v23  ;;  %v242_v32 = vadd.f32 %v979_v2, %v229_v24  ;;  %1014 = vmatpush3.msra.mxu0 %v688_v46  ;;  %v684_v52 = vld [vmem:[%s1415_s2 + $0x10] sm:$0xff] }
  0x16   : > { %363 = vrot.lane.b32.xlu0 %v290_v7, %s1084_s26  ;;  %274 = vst.msk [vmem:[#allocation2 + $0x11] sm:$0xff] %vm251_vm0, %v243_v25  ;;  %275 = vst.msk [vmem:[#allocation2 + $0x21] sm:$0xff] %vm251_vm0, %v244_v26  ;;  %v247_v33 = vmax.f32 %v239_v28, 0.0  ;;  %v248_v34 = vmax.f32 %v240_v30, 0.0  ;;  %1050 = vmatpush3.msra.mxu1 %v688_v46  ;;  %v683_v54 = vld [vmem:[%s1415_s2 + $0x8] sm:$0xff]  ;;  %v682_v55 = vld [vmem:[%s1415_s2] sm:$0xff] }
  0x17   : > { %276 = vst.msk [vmem:[#allocation2 + $0x31] sm:$0xff] %vm251_vm0, %v245_v27  ;;  %277 = vst.msk [vmem:[#allocation2 + $0x41] sm:$0xff] %vm251_vm0, %v246_v29  ;;  %v249_v35 = vmax.f32 %v241_v31, 0.0  ;;  %v250_v36 = vmax.f32 %v242_v32, 0.0  ;;  %1015 = vmatprep.subr.mxu0 %v687_v47  ;;  %1042 = vmatprep.subr.mxu1 %v687_v47  ;;  %v282_v25 = vld [vmem:[#allocation2] sm:$0xff]  ;;  %vm664_vm7 = vcmask 457728  }
  0x18   : > { %278 = vst.msk [vmem:[#allocation2 + $0x51] sm:$0xff] %vm251_vm0, %v247_v33  ;;  %279 = vst.msk [vmem:[#allocation2 + $0x61] sm:$0xff] %vm251_vm0, %v248_v34  ;;  %1016 = vmatpush3.msra.mxu0 %v687_v47  ;;  %1051 = vmatpush3.msra.mxu1 %v687_v47  ;;  %vm673_vm8 = vcmask 523264   ;;  %vm691_vm9 = vcmask 588800   ;;  %vm879_vm10 = vcmask 1040384  }
  0x19   : > { %280 = vst.msk [vmem:[#allocation2 + $0x71] sm:$0xff] %vm251_vm0, %v249_v35  ;;  %281 = vst.msk [vmem:[#allocation2 + $0x81] sm:$0xff] %vm251_vm0, %v250_v36  ;;  %1017 = vmatprep.subr.mxu0 %v686_v50  ;;  %1043 = vmatprep.subr.mxu1 %v686_v50 }
  0x1a   : > { %1018 = vmatpush3.msra.mxu0 %v686_v50  ;;  %1052 = vmatpush3.msra.mxu1 %v686_v50 }
  0x1b   : > { %1019 = vmatprep.subr.mxu0 %v685_v51  ;;  %1044 = vmatprep.subr.mxu1 %v685_v51  ;;  %v338_v8 = vld [vmem:[#allocation2 + $0x90] sm:$0xff] }
  0x1c   : > { %1020 = vmatpush3.msra.mxu0 %v685_v51  ;;  %1053 = vmatpush3.msra.mxu1 %v685_v51  ;;  %v346_v9 = vld [vmem:[#allocation2 + $0x91] sm:$0xff] }
  0x1d   : > { %v299_v37 = vld [vmem:[#allocation2 + $0x12] sm:$0xff]  ;;  %v1170_v39 = vld [vmem:[#allocation2 + $0x20] sm:$0xff]  ;;  %1021 = vmatprep.subr.mxu0 %v684_v52  ;;  %1045 = vmatprep.subr.mxu1 %v684_v52 }
  0x1e   : > { %v291_v38 = vld [vmem:[#allocation2 + $0x11] sm:$0xff]  ;;  %397 = vrot.lane.b32.xlu1 %v299_v37, %s1083_s25  ;;  %v292_v41 = vld [vmem:[#allocation2 + $0x21] sm:$0xff]  ;;  %1022 = vmatpush3.msra.mxu0 %v684_v52 }
  0x1f   : > { %365 = vrot.lane.b32.xlu0 %v291_v38, %s1084_s26  ;;  %v1172_v40 = vld [vmem:[#allocation2 + $0x10] sm:$0xff]  ;;  %v300_v43 = vld [vmem:[#allocation2 + $0x22] sm:$0xff]  ;;  %1054 = vmatpush3.msra.mxu1 %v684_v52 }
  0x20   : > { %v293_v44 = vld [vmem:[#allocation2 + $0x31] sm:$0xff]  ;;  %v1216_v53 = vld [vmem:[#allocation2 + $0x40] sm:$0xff]  ;;  %1023 = vmatprep.subr.mxu0 %v683_v54  ;;  %1046 = vmatprep.subr.mxu1 %v683_v54 }
  0x21   : > { %v1199_v48 = vld [vmem:[#allocation2 + $0x30] sm:$0xff]  ;;  %1024 = vmatpush3.msra.mxu0 %v683_v54  ;;  %1055 = vmatpush3.msra.mxu1 %v683_v54  ;;  %v317_v56 = vld [vmem:[#allocation2 + $0x41] sm:$0xff] }
  0x22   : > { %429 = vrot.lane.b32.xlu1 %v1170_v39, %s1085_s27  ;;  %v301_v49 = vld [vmem:[#allocation2 + $0x32] sm:$0xff]  ;;  %1025 = vmatprep.subr.mxu0 %v682_v55  ;;  %v302_v57 = vld [vmem:[#allocation2 + $0x42] sm:$0xff] }
  0x23   : > { %427 = vrot.lane.b32.xlu0 %v1172_v40, %s1085_s27  ;;  %1047 = vmatprep.subr.mxu1 %v682_v55  ;;  %v295_v58 = vld [vmem:[#allocation2 + $0x51] sm:$0xff]  ;;  %v1246_v61 = vld [vmem:[#allocation2 + $0x60] sm:$0xff] }
  0x24   : > { %1026 = vmatpush3.msra.mxu0 %v682_v55  ;;  %1056 = vmatpush3.msra.mxu1 %v682_v55  ;;  %v1238_v59 = vld [vmem:[#allocation2 + $0x50] sm:$0xff]  ;;  %v319_v62 = vld [vmem:[#allocation2 + $0x61] sm:$0xff] }
  0x25   : > { %v303_v60 = vld [vmem:[#allocation2 + $0x52] sm:$0xff]  ;;  %v304_v63 = vld [vmem:[#allocation2 + $0x62] sm:$0xff] }
  0x26   : > { %367 = vrot.lane.b32.xlu1 %v292_v41, %s1084_s26  ;;  %v297_v0 = vld [vmem:[#allocation2 + $0x71] sm:$0xff]  ;;  %v313_v3 = vld [vmem:[#allocation2 + $0x80] sm:$0xff] }
  0x27   : > { %459 = vrot.lane.b32.xlu0 %v291_v38, %s1086_s28  ;;  %v1262_v1 = vld [vmem:[#allocation2 + $0x70] sm:$0xff]  ;;  %v321_v4 = vld [vmem:[#allocation2 + $0x81] sm:$0xff] }
  0x28   : > { %v305_v2 = vld [vmem:[#allocation2 + $0x72] sm:$0xff]  ;;  %v329_v5 = vld [vmem:[#allocation2 + $0x82] sm:$0xff] }
  0x29   : > { %v354_v12 = vld [vmem:[#allocation2 + $0x92] sm:$0xff] }
  0x2a   : > { %491 = vrot.lane.b32.xlu1 %v299_v37, %s1087_s5 }
  0x2b   : > { %461 = vrot.lane.b32.xlu0 %v292_v41, %s1086_s28 }
  0x2e   : > { %399 = vrot.lane.b32.xlu1 %v300_v43, %s1083_s25 }
  0x2f   : > { %369 = vrot.lane.b32.xlu0 %v293_v44, %s1084_s26 }
  0x32   : > { %523 = vrot.lane.b32.xlu1 %v1170_v39, %s1088_s12 }
  0x33   : > { %493 = vrot.lane.b32.xlu0 %v300_v43, %s1087_s5 }
  0x36   : > { %431 = vrot.lane.b32.xlu1 %v1199_v48, %s1085_s27 }
  0x37   : > { %401 = vrot.lane.b32.xlu0 %v301_v49, %s1083_s25 }
  0x3a   : > { %555 = vrot.lane.b32.xlu1 %v292_v41, %s1089_s22 }
  0x3b   : > { %525 = vrot.lane.b32.xlu0 %v1199_v48, %s1088_s12 }
  0x3e   : > { %463 = vrot.lane.b32.xlu1 %v293_v44, %s1086_s28 }
  0x3f   : > { %433 = vrot.lane.b32.xlu0 %v1216_v53, %s1085_s27 }
  0x42   : > { %587 = vrot.lane.b32.xlu1 %v300_v43, %s1090_s6 }
  0x43   : > { %557 = vrot.lane.b32.xlu0 %v293_v44, %s1089_s22 }
  0x46   : > { %465 = vrot.lane.b32.xlu1 %v317_v56, %s1086_s28 }
  0x47   : > { %371 = vrot.lane.b32.xlu0 %v317_v56, %s1084_s26 }
  0x4a   : > { %589 = vrot.lane.b32.xlu1 %v301_v49, %s1090_s6 }
  0x4b   : > { %495 = vrot.lane.b32.xlu0 %v301_v49, %s1087_s5 }
  0x4e   : > { %403 = vrot.lane.b32.xlu1 %v302_v57, %s1083_s25 }
  0x4f   : > { %373 = vrot.lane.b32.xlu0 %v295_v58, %s1084_s26 }
  0x52   : > { %527 = vrot.lane.b32.xlu1 %v1216_v53, %s1088_s12 }
  0x53   : > { %497 = vrot.lane.b32.xlu0 %v302_v57, %s1087_s5 }
  0x56   : > { %435 = vrot.lane.b32.xlu1 %v1238_v59, %s1085_s27 }
  0x57   : > { %405 = vrot.lane.b32.xlu0 %v303_v60, %s1083_s25 }
  0x5a   : > { %559 = vrot.lane.b32.xlu1 %v317_v56, %s1089_s22 }
  0x5b   : > { %529 = vrot.lane.b32.xlu0 %v1238_v59, %s1088_s12 }
  0x5e   : > { %467 = vrot.lane.b32.xlu1 %v295_v58, %s1086_s28 }
  0x5f   : > { %437 = vrot.lane.b32.xlu0 %v1246_v61, %s1085_s27 }
  0x62   : > { %591 = vrot.lane.b32.xlu1 %v302_v57, %s1090_s6 }
  0x63   : > { %561 = vrot.lane.b32.xlu0 %v295_v58, %s1089_s22 }
  0x66   : > { %469 = vrot.lane.b32.xlu1 %v319_v62, %s1086_s28 }
  0x67   : > { %375 = vrot.lane.b32.xlu0 %v319_v62, %s1084_s26 }
  0x6a   : > { %593 = vrot.lane.b32.xlu1 %v303_v60, %s1090_s6 }
  0x6b   : > { %499 = vrot.lane.b32.xlu0 %v303_v60, %s1087_s5 }
  0x6e   : > { %407 = vrot.lane.b32.xlu1 %v304_v63, %s1083_s25 }
  0x6f   : > { %377 = vrot.lane.b32.xlu0 %v297_v0, %s1084_s26 }
  0x72   : > { %531 = vrot.lane.b32.xlu1 %v1246_v61, %s1088_s12 }
  0x73   : > { %501 = vrot.lane.b32.xlu0 %v304_v63, %s1087_s5 }
  0x76   : > { %439 = vrot.lane.b32.xlu1 %v1262_v1, %s1085_s27 }
  0x77   : > { %409 = vrot.lane.b32.xlu0 %v305_v2, %s1083_s25 }
  0x7a   : > { %563 = vrot.lane.b32.xlu1 %v319_v62, %s1089_s22 }
  0x7b   : > { %533 = vrot.lane.b32.xlu0 %v1262_v1, %s1088_s12 }
  0x7e   : > { %471 = vrot.lane.b32.xlu1 %v297_v0, %s1086_s28 }
  0x7f   : > { %441 = vrot.lane.b32.xlu0 %v313_v3, %s1085_s27  ;;  %s1371_s27 = scalar_lea.vmem %s1416_s3, %s990_s17  ;;  %s977_s17 = sshll.u32 %s1419_s16, 1 }
  0x80   : > { %s208_s7 = scalar_lea.vmem %s1417_s4, %s977_s17 }
  0x82   : > { %595 = vrot.lane.b32.xlu1 %v304_v63, %s1090_s6 }
  0x83   : > { %565 = vrot.lane.b32.xlu0 %v297_v0, %s1089_s22 }
  0x86   : > { %503 = vrot.lane.b32.xlu1 %v305_v2, %s1087_s5 }
  0x87   : > { %473 = vrot.lane.b32.xlu0 %v321_v4, %s1086_s28  ;;  %v396_v6 = vpop.permute.xlu1 %395 }
  0x88   : > { %v364_v7 = vpop.permute.xlu0 %363 }
  0x89   : > { %v611_v26 = vsel %vm251_vm0, %v282_v25, %v364_v7 }
  0x8a   : > { %505 = vrot.lane.b32.xlu1 %v329_v5, %s1087_s5  ;;  %v620_v29 = vsel %vm619_vm2, %v611_v26, %v396_v6 }
  0x8b   : > { %597 = vrot.lane.b32.xlu0 %v305_v2, %s1090_s6 }
  0x8e   : > { %537 = vrot.lane.b32.xlu1 %v338_v8, %s1088_s12 }
  0x8f   : > { %535 = vrot.lane.b32.xlu0 %v313_v3, %s1088_s12 }
  0x90   : > { %v398_v10 = vpop.permute.xlu1 %397 }
  0x91   : > { %v366_v11 = vpop.permute.xlu0 %365 }
  0x92   : > { %569 = vrot.lane.b32.xlu1 %v346_v9, %s1089_s22  ;;  %v612_v36 = vsel %vm251_vm0, %v1172_v40, %v366_v11 }
  0x93   : > { %567 = vrot.lane.b32.xlu0 %v321_v4, %s1089_s22  ;;  %v621_v43 = vsel %vm619_vm2, %v612_v36, %v398_v10 }
  0x94   : > { %v430_v13 = vpop.permute.xlu1 %429 }
  0x95   : > { %v428_v14 = vpop.permute.xlu0 %427  ;;  %v630_v44 = vsel %vm628_vm3, %v621_v43, %v430_v13 }
  0x96   : > { %601 = vrot.lane.b32.xlu1 %v354_v12, %s1090_s6  ;;  %v629_v30 = vsel %vm628_vm3, %v620_v29, %v428_v14 }
  0x97   : > { %599 = vrot.lane.b32.xlu0 %v329_v5, %s1090_s6 }
  0x98   : > { %v368_v15 = vpop.permute.xlu1 %367 }
  0x99   : > { %v460_v16 = vpop.permute.xlu0 %459  ;;  %v613_v2 = vsel %vm251_vm0, %v1170_v39, %v368_v15 }
  0x9a   : > { %v638_v33 = vsel %vm637_vm4, %v629_v30, %v460_v16 }
  0x9c   : > { %v492_v17 = vpop.permute.xlu1 %491 }
  0x9d   : > { %v462_v18 = vpop.permute.xlu0 %461  ;;  %v647_v34 = vsel %vm646_vm5, %v638_v33, %v492_v17 }
  0x9e   : > { %v639_v47 = vsel %vm637_vm4, %v630_v44, %v462_v18 }
  0xa0   : > { %v400_v19 = vpop.permute.xlu1 %399 }
  0xa1   : > { %v1284_v20 = vpop.permute.xlu0 %369  ;;  %v622_v3 = vsel %vm619_vm2, %v613_v2, %v400_v19 }
  0xa2   : > { %v614_v39 = vsel %vm251_vm0, %v1199_v48, %v1284_v20 }
  0xa4   : > { %v524_v21 = vpop.permute.xlu1 %523 }
  0xa5   : > { %v494_v22 = vpop.permute.xlu0 %493  ;;  %v656_v35 = vsel %vm655_vm6, %v647_v34, %v524_v21 }
  0xa6   : > { %v648_v49 = vsel %vm646_vm5, %v639_v47, %v494_v22 }
  0xa8   : > { %v432_v23 = vpop.permute.xlu1 %431 }
  0xa9   : > { %v402_v24 = vpop.permute.xlu0 %401  ;;  %v631_v4 = vsel %vm628_vm3, %v622_v3, %v432_v23 }
  0xaa   : > { %v623_v14 = vsel %vm619_vm2, %v614_v39, %v402_v24 }
  0xac   : > { %v556_v27 = vpop.permute.xlu1 %555 }
  0xad   : > { %v526_v28 = vpop.permute.xlu0 %525  ;;  %v665_v37 = vsel %vm664_vm7, %v656_v35, %v556_v27 }
  0xae   : > { %v657_v40 = vsel %vm655_vm6, %v648_v49, %v526_v28 }
  0xb0   : > { %v464_v31 = vpop.permute.xlu1 %463 }
  0xb1   : > { %v434_v32 = vpop.permute.xlu0 %433  ;;  %v640_v7 = vsel %vm637_vm4, %v631_v4, %v464_v31 }
  0xb2   : > { %v632_v15 = vsel %vm628_vm3, %v623_v14, %v434_v32 }
  0xb4   : > { %v588_v38 = vpop.permute.xlu1 %587 }
  0xb5   : > { %v558_v41 = vpop.permute.xlu0 %557  ;;  %v674_v42 = vsel %vm673_vm8, %v665_v37, %v588_v38 }
  0xb6   : > { %1027 = vmatprep.mubr.msk.f32.mxu0 %vm691_vm9, %v674_v42  ;;  %v666_v50 = vsel %vm664_vm7, %v657_v40, %v558_v41 }
  0xb8   : > { %v466_v45 = vpop.permute.xlu1 %465 }
  0xb9   : > { %v372_v46 = vpop.permute.xlu0 %371  ;;  %v641_v18 = vsel %vm637_vm4, %v632_v15, %v466_v45 }
  0xba   : > { %v615_v32 = vsel %vm251_vm0, %v1216_v53, %v372_v46 }
  0xbc   : > { %v590_v51 = vpop.permute.xlu1 %589 }
  0xbd   : > { %v496_v52 = vpop.permute.xlu0 %495  ;;  %v675_v54 = vsel %vm673_vm8, %v666_v50, %v590_v51 }
  0xbe   : > { %1028 = vmatmul.mubr.msk.f32.vlgmr.msra.gmra.mxu0 %vm691_vm9, %v675_v54  ;;  %v649_v8 = vsel %vm646_vm5, %v640_v7, %v496_v52 }
  0xc0   : > { %v404_v55 = vpop.permute.xlu1 %403 }
  0xc1   : > { %v374_v56 = vpop.permute.xlu0 %373  ;;  %v624_v33 = vsel %vm619_vm2, %v615_v32, %v404_v55 }
  0xc2   : > { %v616_v53 = vsel %vm251_vm0, %v1238_v59, %v374_v56 }
  0xc4   : > { %v528_v57 = vpop.permute.xlu1 %527 }
  0xc5   : > { %v498_v58 = vpop.permute.xlu0 %497  ;;  %v658_v9 = vsel %vm655_vm6, %v649_v8, %v528_v57 }
  0xc6   : > { %v650_v19 = vsel %vm646_vm5, %v641_v18, %v498_v58 }
  0xc8   : > { %v436_v60 = vpop.permute.xlu1 %435 }
  0xc9   : > { %v406_v62 = vpop.permute.xlu0 %405  ;;  %v633_v34 = vsel %vm628_vm3, %v624_v33, %v436_v60 }
  0xca   : > { %v625_v46 = vsel %vm619_vm2, %v616_v53, %v406_v62 }
  0xcc   : > { %v560_v63 = vpop.permute.xlu1 %559 }
  0xcd   : > { %v530_v0 = vpop.permute.xlu0 %529  ;;  %v667_v10 = vsel %vm664_vm7, %v658_v9, %v560_v63 }
  0xce   : > { %v659_v21 = vsel %vm655_vm6, %v650_v19, %v530_v0 }
  0xd0   : > { %v468_v5 = vpop.permute.xlu1 %467 }
  0xd1   : > { %v438_v6 = vpop.permute.xlu0 %437  ;;  %v642_v37 = vsel %vm637_vm4, %v633_v34, %v468_v5 }
  0xd2   : > { %v634_v47 = vsel %vm628_vm3, %v625_v46, %v438_v6 }
  0xd4   : > { %v592_v11 = vpop.permute.xlu1 %591 }
  0xd5   : > { %v562_v12 = vpop.permute.xlu0 %561  ;;  %v676_v13 = vsel %vm673_vm8, %v667_v10, %v592_v11 }
  0xd6   : > { %1030 = vmatprep.mubr.msk.f32.mxu0 %vm691_vm9, %v676_v13  ;;  %v668_v22 = vsel %vm664_vm7, %v659_v21, %v562_v12 }
  0xd8   : > { %v470_v16 = vpop.permute.xlu1 %469 }
  0xd9   : > { %v376_v17 = vpop.permute.xlu0 %375  ;;  %v643_v50 = vsel %vm637_vm4, %v634_v47, %v470_v16 }
  0xda   : > { %v617_v60 = vsel %vm251_vm0, %v1246_v61, %v376_v17 }
  0xdc   : > { %v594_v23 = vpop.permute.xlu1 %593 }
  0xdd   : > { %v500_v25 = vpop.permute.xlu0 %499  ;;  %v677_v48 = vsel %vm673_vm8, %v668_v22, %v594_v23 }
  0xde   : > { %1031 = vmatmul.mubr.msk.f32.gmra.mxu0 %vm691_vm9, %v677_v48  ;;  %v651_v38 = vsel %vm646_vm5, %v642_v37, %v500_v25 }
  0xe0   : > { %v408_v20 = vpop.permute.xlu1 %407 }
  0xe1   : > { %v378_v24 = vpop.permute.xlu0 %377  ;;  %v626_v63 = vsel %vm619_vm2, %v617_v60, %v408_v20 }
  0xe2   : > { %v618_v62 = vsel %vm251_vm0, %v1262_v1, %v378_v24 }
  0xe4   : > { %v532_v26 = vpop.permute.xlu1 %531 }
  0xe5   : > { %v502_v27 = vpop.permute.xlu0 %501  ;;  %v660_v41 = vsel %vm655_vm6, %v651_v38, %v532_v26 }
  0xe6   : > { %v652_v51 = vsel %vm646_vm5, %v643_v50, %v502_v27 }
  0xe8   : > { %v440_v28 = vpop.permute.xlu1 %439 }
  0xe9   : > { %v410_v29 = vpop.permute.xlu0 %409  ;;  %v635_v2 = vsel %vm628_vm3, %v626_v63, %v440_v28 }
  0xea   : > { %v627_v0 = vsel %vm619_vm2, %v618_v62, %v410_v29 }
  0xec   : > { %v564_v30 = vpop.permute.xlu1 %563 }
  0xed   : > { %v534_v31 = vpop.permute.xlu0 %533  ;;  %v669_v42 = vsel %vm664_vm7, %v660_v41, %v564_v30 }
  0xee   : > { %v661_v52 = vsel %vm655_vm6, %v652_v51, %v534_v31 }
  0xf0   : > { %v472_v35 = vpop.permute.xlu1 %471 }
  0xf1   : > { %v442_v36 = vpop.permute.xlu0 %441  ;;  %v644_v6 = vsel %vm637_vm4, %v635_v2, %v472_v35 }
  0xf2   : > { %v636_v3 = vsel %vm628_vm3, %v627_v0, %v442_v36 }
  0xf4   : > { %v596_v43 = vpop.permute.xlu1 %595 }
  0xf5   : > { %v566_v44 = vpop.permute.xlu0 %565  ;;  %v678_v45 = vsel %vm673_vm8, %v669_v42, %v596_v43 }
  0xf6   : > { %1033 = vmatprep.mubr.msk.f32.mxu1 %vm691_vm9, %v678_v45  ;;  %v670_v54 = vsel %vm664_vm7, %v661_v52, %v566_v44 }
  0xf8   : > { %v504_v49 = vpop.permute.xlu1 %503 }
  0xf9   : > { %v474_v40 = vpop.permute.xlu0 %473  ;;  %v653_v61 = vsel %vm646_vm5, %v644_v6, %v504_v49 }
  0xfa   : > { %v645_v7 = vsel %vm637_vm4, %v636_v3, %v474_v40 }
  0xfc   : > { %v506_v55 = vpop.permute.xlu1 %505 }
  0xfd   : > { %v598_v57 = vpop.permute.xlu0 %597  ;;  %v654_v8 = vsel %vm646_vm5, %v645_v7, %v506_v55 }
  0xfe   : > { %v679_v59 = vsel %vm673_vm8, %v670_v54, %v598_v57 }
  0xff   : > { %1034 = vmatmul.mubr.msk.f32.vlgmr.msra.gmra.mxu1 %vm691_vm9, %v679_v59 }
 0x100   : > { %v538_v56 = vpop.permute.xlu1 %537 }
 0x101   : > { %v536_v58 = vpop.permute.xlu0 %535  ;;  %v663_v1 = vsel %vm655_vm6, %v654_v8, %v538_v56 }
 0x102   : > { %v662_v9 = vsel %vm655_vm6, %v653_v61, %v536_v58 }
 0x104   : > { %v570_v4 = vpop.permute.xlu1 %569 }
 0x105   : > { %v568_v5 = vpop.permute.xlu0 %567  ;;  %v672_v10 = vsel %vm664_vm7, %v663_v1, %v570_v4 }
 0x106   : > { %v671_v11 = vsel %vm664_vm7, %v662_v9, %v568_v5 }
 0x108   : > { %v602_v12 = vpop.permute.xlu1 %601 }
 0x109   : > { %v600_v13 = vpop.permute.xlu0 %599  ;;  %v681_v39 = vsel %vm673_vm8, %v672_v10, %v602_v12 }
 0x10a   : > { %v680_v14 = vsel %vm673_vm8, %v671_v11, %v600_v13 }
 0x10b   : > { %1036 = vmatprep.mubr.msk.f32.mxu1 %vm691_vm9, %v680_v14 }
 0x10c   : > { %1037 = vmatmul.mubr.msk.f32.gmra.mxu1 %vm691_vm9, %v681_v39 }
 0x17e   : > { %v1029_v15 = vpop.f32.mrf.mxu0 }
 0x17f   : > { %822 = vst.msk [vmem:[%s1371_s27 + $0x8] sm:$0xff] %vm251_vm0, %v1029_v15  ;;  %v851_v16 = vmul.f32 %v1029_v15, %v1029_v15  ;;  %v830_v18 = vsel %vm251_vm0, %v1029_v15, 0.0 }
 0x180   : > { %v782_v17 = vpop.f32.mrf.mxu0 }
 0x181   : > { %821 = vst.msk [vmem:[%s1371_s27] sm:$0xff] %vm251_vm0, %v782_v17  ;;  %v829_v19 = vsel %vm251_vm0, %v782_v17, 0.0  ;;  %v850_v21 = vmul.f32 %v782_v17, %v782_v17  ;;  %v859_v23 = vsel %vm251_vm0, %v851_v16, 0.0 }
 0x182   : > { %v831_v22 = vadd.f32 %v830_v18, %v829_v19 }
 0x183   : > { %v858_v25 = vsel %vm251_vm0, %v850_v21, 0.0 }
 0x184   : > { %v860_v48 = vadd.f32 %v859_v23, %v858_v25 }
 0x19e   : > { %v1032_v20 = vpop.f32.mrf.mxu0 }
 0x19f   : > { %824 = vst.msk [vmem:[%s1371_s27 + $0x18] sm:$0xff] %vm251_vm0, %v1032_v20  ;;  %v853_v32 = vmul.f32 %v1032_v20, %v1032_v20  ;;  %v834_v35 = vsel %vm251_vm0, %v1032_v20, 0.0 }
 0x1a0   : > { %v792_v24 = vpop.f32.mrf.mxu0 }
 0x1a1   : > { %823 = vst.msk [vmem:[%s1371_s27 + $0x10] sm:$0xff] %vm251_vm0, %v792_v24  ;;  %v852_v26 = vmul.f32 %v792_v24, %v792_v24  ;;  %v832_v28 = vsel %vm251_vm0, %v792_v24, 0.0  ;;  %v863_v38 = vsel %vm251_vm0, %v853_v32, 0.0 }
 0x1a2   : > { %v833_v31 = vadd.f32 %v832_v28, %v831_v22 }
 0x1a3   : > { %v861_v30 = vsel %vm251_vm0, %v852_v26, 0.0 }
 0x1a4   : > { %v862_v34 = vadd.f32 %v861_v30, %v860_v48  ;;  %v835_v37 = vadd.f32 %v834_v35, %v833_v31 }
 0x1a6   : > { %v864_v42 = vadd.f32 %v863_v38, %v862_v34 }
 0x1bf   : > { %v1035_v27 = vpop.f32.mrf.mxu1 }
 0x1c0   : > { %826 = vst.msk [vmem:[%s1371_s27 + $0x28] sm:$0xff] %vm251_vm0, %v1035_v27  ;;  %v855_v44 = vmul.f32 %v1035_v27, %v1035_v27  ;;  %v838_v46 = vsel %vm251_vm0, %v1035_v27, 0.0 }
 0x1c1   : > { %v802_v29 = vpop.f32.mrf.mxu1 }
 0x1c2   : > { %825 = vst.msk [vmem:[%s1371_s27 + $0x20] sm:$0xff] %vm251_vm0, %v802_v29  ;;  %v854_v33 = vmul.f32 %v802_v29, %v802_v29  ;;  %v836_v36 = vsel %vm251_vm0, %v802_v29, 0.0  ;;  %v867_v40 = vsel %vm251_vm0, %v855_v44, 0.0 }
 0x1c3   : > { %v837_v43 = vadd.f32 %v836_v36, %v835_v37 }
 0x1c4   : > { %v865_v41 = vsel %vm251_vm0, %v854_v33, 0.0 }
 0x1c5   : > { %v866_v45 = vadd.f32 %v865_v41, %v864_v42  ;;  %v839_v49 = vadd.f32 %v838_v46, %v837_v43 }
 0x1c7   : > { %v868_v55 = vadd.f32 %v867_v40, %v866_v45 }
 0x1cc   : > { %v1038_v53 = vpop.f32.mrf.mxu1 }
 0x1cd   : > { %828 = vst.msk [vmem:[%s1371_s27 + $0x38] sm:$0xff] %vm251_vm0, %v1038_v53  ;;  %v857_v50 = vmul.f32 %v1038_v53, %v1038_v53  ;;  %v842_v57 = vsel %vm251_vm0, %v1038_v53, 0.0 }
 0x1ce   : > { %v812_v47 = vpop.f32.mrf.mxu1 }
 0x1cf   : > { %827 = vst.msk [vmem:[%s1371_s27 + $0x30] sm:$0xff] %vm251_vm0, %v812_v47  ;;  %v840_v51 = vsel %vm251_vm0, %v812_v47, 0.0  ;;  %v856_v52 = vmul.f32 %v812_v47, %v812_v47  ;;  %v871_v60 = vsel %vm251_vm0, %v857_v50, 0.0 }
 0x1d0   : > { %v841_v54 = vadd.f32 %v840_v51, %v839_v49 }
 0x1d1   : > { %v869_v59 = vsel %vm251_vm0, %v856_v52, 0.0 }
 0x1d2   : > { %v843_v56 = vadd.f32 %v842_v57, %v841_v54  ;;  %v870_v58 = vadd.f32 %v869_v59, %v868_v55 }
 0x1d4   : > { %v844_v62 = vrot.slane %v843_v56, 4  ;;  %v872_v63 = vadd.f32 %v871_v60, %v870_v58 }
 0x1d6   : > { %v845_v0 = vadd.f32 %v844_v62, %v843_v56  ;;  %v873_v2 = vrot.slane %v872_v63, 4 }
 0x1d8   : > { %v846_v3 = vrot.slane %v845_v0, 2  ;;  %v874_v4 = vadd.f32 %v873_v2, %v872_v63 }
 0x1da   : > { %v847_v5 = vadd.f32 %v846_v3, %v845_v0  ;;  %v875_v6 = vrot.slane %v874_v4, 2 }
 0x1dc   : > { %v848_v7 = vrot.slane %v847_v5, 1  ;;  %v876_v61 = vadd.f32 %v875_v6, %v874_v4 }
 0x1de   : > { %v877_v8 = vrot.slane %v876_v61, 1  ;;  %v849_v1 = vadd.f32 %v848_v7, %v847_v5 }
 0x1e0   : > { %v878_v9 = vadd.f32 %v877_v8, %v876_v61 }
 0x1e2   : > { %v880_v10 = vsel %vm879_vm10, %v849_v1, %v878_v9 }
 0x1e3   : > { %881 = vst.msk [vmem:[%s208_s7] sm:$0x3] %vm253_vm1, %v880_v10 }
 0x1e4 PF: > { %s15_s15 = sadd.s32 1, %s1080_s15  }
 0x1e5   : > { %p12_p4 = scmp.ge.s32.totalorder %s15_s15, 4  }
 0x1e7   :  { %14 = sbr.rel (!%p12_p4) target bundleno = 1 (0x1), region = 76 }

// kernel: downsampling_forward.3
= control target key start
LH: loop header
LB: loop body
LE: loop exit
PB: predicated region body
PF: predicated region fallthrough
CT: control target
= control target key end

     0   :  { %s1144_s12 = smov 0   ;;  %s1497_s0 = inlined_call_operand.vmem [shape: f32[2,16,8,8], index: 0, kind: input, shape index: {}]   ;;  %s1498_s1 = inlined_call_operand.vmem [shape: f32[36,8], index: 1, kind: input, shape index: {}]   ;;  %s1499_s2 = inlined_call_operand.vmem [shape: f32[2,64,8], index: 2, kind: output, shape index: {0}]   ;;  %s1500_s3 = inlined_call_operand.vmem [shape: f32[2,2,8], index: 3, kind: output, shape index: {1}]  }
   0x1 LB: > { %s1020_s13 = sadd.s32 4294967295, %s1112_s12   ;;  %p1024_p0 = scmp.ge.s32.totalorder %s1112_s12, 1  ;;  %s1112_s12 = sphi %s1144_s12, %s14_s12  }
   0x2   : > { %p140_p1 = scmp.lt.s32.totalorder %s1112_s12, 3 }
   0x4   : > { %p141_p2 = pnand %p1024_p0, %p140_p1 }
   0x5   : > { %p1152_p3 = scmp.lt.s32.totalorder (!%p141_p2), %s1020_s13, 1  ;;  %s1115_s19 = smov (!%p141_p2), 124  }
   0x6   : > { %144 = sbr.rel (%p141_p2) target bundleno = 604 (0x25c), region = 28  ;;  %s1116_s20 = smov (!%p141_p2), 4  }
   0x7   : > { %s1117_s21 = smov (!%p141_p2), 8   ;;  %s1118_s22 = smov (!%p141_p2), 12  }
   0x8   : > { %s1119_s23 = smov (!%p141_p2), 16   ;;  %s1120_s24 = smov (!%p141_p2), 20  }
   0x9   : > { %s1121_s25 = smov (!%p141_p2), 24   ;;  %s1122_s7 = smov (!%p141_p2), 28  }
   0xa   : > { %s1123_s10 = smov (!%p141_p2), 32  }
   0xb   : > { %vm278_vm0 = vcmask 31744   ;;  %vm304_vm1 = vcmask 25600   ;;  %v1114_v0 = vmov 0.0   ;;  %s1503_s13 = smov (!%p1152_p3, %s1020_s13), 1  ;;  %vm763_vm2 = vcmask 1043456  }
   0xc   : > { %306 = vst.msk [vmem:[#allocation2 + $0x10] sm:$0xff] %vm278_vm0, %v1114_v0  ;;  %303 = vst.msk [vmem:[#allocation2] sm:$0xff] %vm278_vm0, %v1114_v0  ;;  %s1041_s15 = sshll.u32 %s1503_s13, 7  ;;  %vm670_vm3 = vcmask 64512   ;;  %vm679_vm4 = vcmask 97280   ;;  %vm688_vm5 = vcmask 130048  }
   0xd   : > { %307 = vst.msk [vmem:[#allocation2 + $0x18] sm:$0x3] %vm304_vm1, %v1114_v0  ;;  %305 = vst.msk [vmem:[#allocation2 + $0x8] sm:$0x3] %vm304_vm1, %v1114_v0  ;;  %s1184_s18 = scalar_lea.vmem %s1497_s0, %s1041_s15  ;;  %vm697_vm6 = vcmask 162816   ;;  %vm706_vm7 = vcmask 195584  }
   0xe   : > { %308 = vst.msk [vmem:[#allocation2 + $0x20] sm:$0xff] %vm278_vm0, %v1114_v0  ;;  %310 = vst.msk [vmem:[#allocation2 + $0x30] sm:$0xff] %vm278_vm0, %v1114_v0  ;;  %v182_v1 = vld [vmem:[%s1184_s18] sm:$0xff]  ;;  %v184_v2 = vld [vmem:[%s1184_s18 + $0x10] sm:$0xff]  ;;  %vm715_vm8 = vcmask 228352   ;;  %vm724_vm9 = vcmask 261120  }
   0xf   : > { %309 = vst.msk [vmem:[#allocation2 + $0x28] sm:$0x3] %vm304_vm1, %v1114_v0  ;;  %311 = vst.msk [vmem:[#allocation2 + $0x38] sm:$0x3] %vm304_vm1, %v1114_v0  ;;  %214 = vrot.lane.b32.xlu0 %v182_v1, %s1115_s19  ;;  %218 = vrot.lane.b32.xlu1 %v184_v2, %s1115_s19  ;;  %v183_v3 = vld [vmem:[%s1184_s18 + $0x8] sm:$0xff]  ;;  %v185_v4 = vld [vmem:[%s1184_s18 + $0x18] sm:$0xff] }
  0x10   : > { %312 = vst.msk [vmem:[#allocation2 + $0x40] sm:$0xff] %vm278_vm0, %v1114_v0  ;;  %314 = vst.msk [vmem:[#allocation2 + $0x50] sm:$0xff] %vm278_vm0, %v1114_v0  ;;  %v187_v5 = vld [vmem:[%s1184_s18 + $0x28] sm:$0xff]  ;;  %v186_v6 = vld [vmem:[%s1184_s18 + $0x20] sm:$0xff]  ;;  %vm738_vm10 = vcmask 293888   ;;  %s1042_s11 = sshll.u32 %s1503_s13, 6 }
  0x11   : > { %313 = vst.msk [vmem:[#allocation2 + $0x48] sm:$0x3] %vm304_vm1, %v1114_v0  ;;  %315 = vst.msk [vmem:[#allocation2 + $0x58] sm:$0x3] %vm304_vm1, %v1114_v0  ;;  %v189_v7 = vld [vmem:[%s1184_s18 + $0x38] sm:$0xff]  ;;  %v188_v8 = vld [vmem:[%s1184_s18 + $0x30] sm:$0xff]  ;;  %s1456_s16 = scalar_lea.vmem %s1499_s2, %s1042_s11 }
  0x12   : > { %316 = vst.msk [vmem:[#allocation2 + $0x60] sm:$0xff] %vm278_vm0, %v1114_v0  ;;  %318 = vst.msk [vmem:[#allocation2 + $0x70] sm:$0xff] %vm278_vm0, %v1114_v0  ;;  %v1195_v9 = vld [vmem:[%s1184_s18 + $0x48] sm:$0xff]  ;;  %v1198_v10 = vld [vmem:[%s1184_s18 + $0x40] sm:$0xff]  ;;  %s1029_s17 = sshll.u32 %s1503_s13, 1  ;;  %vm930_vm11 = vcmask 1040384  }
  0x13   : > { %317 = vst.msk [vmem:[#allocation2 + $0x68] sm:$0x3] %vm304_vm1, %v1114_v0  ;;  %319 = vst.msk [vmem:[#allocation2 + $0x78] sm:$0x3] %vm304_vm1, %v1114_v0  ;;  %216 = vrot.lane.b32.xlu0 %v183_v3, %s1115_s19  ;;  %220 = vrot.lane.b32.xlu1 %v185_v4, %s1115_s19  ;;  %v1203_v11 = vld [vmem:[%s1184_s18 + $0x58] sm:$0xff]  ;;  %v1206_v12 = vld [vmem:[%s1184_s18 + $0x50] sm:$0xff] }
  0x14   : > { %320 = vst.msk [vmem:[#allocation2 + $0x80] sm:$0xff] %vm278_vm0, %v1114_v0  ;;  %322 = vst.msk [vmem:[#allocation2 + $0x90] sm:$0xff] %vm278_vm0, %v1114_v0  ;;  %v1211_v13 = vld [vmem:[%s1184_s18 + $0x68] sm:$0xff]  ;;  %v1214_v14 = vld [vmem:[%s1184_s18 + $0x60] sm:$0xff]  ;;  %vm932_vm12 = vcmask 58368  }
  0x15   : > { %321 = vst.msk [vmem:[#allocation2 + $0x88] sm:$0x3] %vm304_vm1, %v1114_v0  ;;  %323 = vst.msk [vmem:[#allocation2 + $0x98] sm:$0x3] %vm304_vm1, %v1114_v0  ;;  %v1219_v15 = vld [vmem:[%s1184_s18 + $0x78] sm:$0xff]  ;;  %v1222_v16 = vld [vmem:[%s1184_s18 + $0x70] sm:$0xff] }
  0x16   : > { %v341_v17 = vld [vmem:[#allocation2 + $0x1] sm:$0xff] }
  0x17   : > { %224 = vrot.lane.b32.xlu1 %v187_v5, %s1115_s19  ;;  %222 = vrot.lane.b32.xlu0 %v186_v6, %s1115_s19  ;;  %v349_v18 = vld [vmem:[#allocation2 + $0x2] sm:$0xff] }
  0x1b   : > { %228 = vrot.lane.b32.xlu1 %v189_v7, %s1115_s19  ;;  %226 = vrot.lane.b32.xlu0 %v188_v8, %s1115_s19 }
  0x1f   : > { %232 = vrot.lane.b32.xlu1 %v1195_v9, %s1115_s19  ;;  %230 = vrot.lane.b32.xlu0 %v1198_v10, %s1115_s19 }
  0x23   : > { %236 = vrot.lane.b32.xlu1 %v1203_v11, %s1115_s19  ;;  %234 = vrot.lane.b32.xlu0 %v1206_v12, %s1115_s19 }
  0x27   : > { %240 = vrot.lane.b32.xlu1 %v1211_v13, %s1115_s19  ;;  %238 = vrot.lane.b32.xlu0 %v1214_v14, %s1115_s19 }
  0x2b   : > { %244 = vrot.lane.b32.xlu1 %v1219_v15, %s1115_s19  ;;  %242 = vrot.lane.b32.xlu0 %v1222_v16, %s1115_s19 }
  0x2f   : > { %414 = vrot.lane.b32.xlu0 %v341_v17, %s1116_s20 }
  0x33   : > { %446 = vrot.lane.b32.xlu0 %v349_v18, %s1117_s21 }
  0x81   : > { %v215_v19 = vpop.permute.xlu0 %214  ;;  %v219_v20 = vpop.permute.xlu1 %218 }
  0x82   : > { %v264_v21 = vmax.f32 %v184_v2, %v219_v20  ;;  %v262_v22 = vmax.f32 %v182_v1, %v215_v19  ;;  %v737_v20 = vld [vmem:[%s1498_s1 + $0x20] sm:$0xf] }
  0x83   : > { %1056 = vmatprep.subr.msk.mxu0 %vm763_vm2, %v737_v20  ;;  %1078 = vmatprep.subr.msk.mxu1 %vm763_vm2, %v737_v20 }
  0x84   : > { %v282_v25 = vsel %vm278_vm0, %v264_v21, -inf  ;;  %v279_v28 = vsel %vm278_vm0, %v262_v22, -inf  ;;  %1057 = vmatpush3.msk.msra.mxu0 %vm763_vm2, %v737_v20  ;;  %1083 = vmatpush3.msk.msra.mxu1 %vm763_vm2, %v737_v20  ;;  %v736_v22 = vld [vmem:[%s1498_s1 + $0x18] sm:$0xff] }
  0x85   : > { %v217_v23 = vpop.permute.xlu0 %216  ;;  %v221_v24 = vpop.permute.xlu1 %220  ;;  %1058 = vmatprep.subr.mxu0 %v736_v22  ;;  %1079 = vmatprep.subr.mxu1 %v736_v22 }
  0x86   : > { %v263_v26 = vmax.f32 %v183_v3, %v217_v23  ;;  %v265_v27 = vmax.f32 %v185_v4, %v221_v24  ;;  %v735_v23 = vld [vmem:[%s1498_s1 + $0x10] sm:$0xff]  ;;  %1059 = vmatpush3.msra.mxu0 %v736_v22  ;;  %1084 = vmatpush3.msra.mxu1 %v736_v22  ;;  %v734_v24 = vld [vmem:[%s1498_s1 + $0x8] sm:$0xff] }
  0x87   : > { %1060 = vmatprep.subr.mxu0 %v735_v23  ;;  %1080 = vmatprep.subr.mxu1 %v735_v23 }
  0x88   : > { %v280_v29 = vsel %vm278_vm0, %v263_v26, -inf  ;;  %v283_v30 = vsel %vm278_vm0, %v265_v27, -inf  ;;  %1061 = vmatpush3.msra.mxu0 %v735_v23  ;;  %1085 = vmatpush3.msra.mxu1 %v735_v23  ;;  %v733_v26 = vld [vmem:[%s1498_s1] sm:$0xff] }
  0x89   : > { %v281_v31 = vmax.f32 %v279_v28, %v280_v29  ;;  %v284_v32 = vmax.f32 %v282_v25, %v283_v30  ;;  %v225_v33 = vpop.permute.xlu1 %224  ;;  %v223_v34 = vpop.permute.xlu0 %222  ;;  %1062 = vmatprep.subr.mxu0 %v734_v24  ;;  %1081 = vmatprep.subr.mxu1 %v734_v24 }
  0x8a   : > { %v267_v35 = vmax.f32 %v187_v5, %v225_v33  ;;  %v266_v36 = vmax.f32 %v186_v6, %v223_v34  ;;  %1063 = vmatpush3.msra.mxu0 %v734_v24  ;;  %1086 = vmatpush3.msra.mxu1 %v734_v24 }
  0x8b   : > { %325 = vst.msk [vmem:[#allocation2 + $0x11] sm:$0xff] %vm278_vm0, %v281_v31  ;;  %326 = vst.msk [vmem:[#allocation2 + $0x21] sm:$0xff] %vm278_vm0, %v284_v32  ;;  %1064 = vmatprep.subr.mxu0 %v733_v26  ;;  %1082 = vmatprep.subr.mxu1 %v733_v26 }
  0x8c   : > { %v286_v37 = vsel %vm278_vm0, %v267_v35, -inf  ;;  %v285_v38 = vsel %vm278_vm0, %v266_v36, -inf  ;;  %1065 = vmatpush3.msra.mxu0 %v733_v26  ;;  %1087 = vmatpush3.msra.mxu1 %v733_v26 }
  0x8d   : > { %v287_v39 = vmax.f32 %v285_v38, %v286_v37  ;;  %v229_v40 = vpop.permute.xlu1 %228  ;;  %v227_v41 = vpop.permute.xlu0 %226 }
  0x8e   : > { %v269_v42 = vmax.f32 %v189_v7, %v229_v40  ;;  %v268_v43 = vmax.f32 %v188_v8, %v227_v41 }
  0x8f   : > { %327 = vst.msk [vmem:[#allocation2 + $0x31] sm:$0xff] %vm278_vm0, %v287_v39 }
  0x90   : > { %v289_v44 = vsel %vm278_vm0, %v269_v42, -inf  ;;  %v288_v45 = vsel %vm278_vm0, %v268_v43, -inf  ;;  %v389_v42 = vld [vmem:[#allocation2 + $0x90] sm:$0xff] }
  0x91   : > { %v290_v46 = vmax.f32 %v288_v45, %v289_v44  ;;  %v233_v47 = vpop.permute.xlu1 %232  ;;  %v231_v48 = vpop.permute.xlu0 %230  ;;  %v397_v45 = vld [vmem:[#allocation2 + $0x91] sm:$0xff] }
  0x92   : > { %v1239_v49 = vld [vmem:[#allocation2 + $0x10] sm:$0xff]  ;;  %v271_v51 = vmax.f32 %v1195_v9, %v233_v47  ;;  %v270_v52 = vmax.f32 %v1198_v10, %v231_v48  ;;  %v366_v2 = vld [vmem:[#allocation2 + $0x21] sm:$0xff] }
  0x93   : > { %v342_v50 = vld [vmem:[#allocation2 + $0x11] sm:$0xff]  ;;  %478 = vrot.lane.b32.xlu0 %v1239_v49, %s1118_s22  ;;  %328 = vst.msk [vmem:[#allocation2 + $0x41] sm:$0xff] %vm278_vm0, %v290_v46  ;;  %v1256_v3 = vld [vmem:[#allocation2 + $0x20] sm:$0xff] }
  0x94   : > { %416 = vrot.lane.b32.xlu1 %v342_v50, %s1116_s20  ;;  %v292_v53 = vsel %vm278_vm0, %v271_v51, -inf  ;;  %v291_v54 = vsel %vm278_vm0, %v270_v52, -inf  ;;  %v350_v58 = vld [vmem:[#allocation2 + $0x12] sm:$0xff]  ;;  %v374_v19 = vld [vmem:[#allocation2 + $0x22] sm:$0xff] }
  0x95   : > { %v293_v55 = vmax.f32 %v291_v54, %v292_v53  ;;  %v237_v56 = vpop.permute.xlu1 %236  ;;  %v235_v57 = vpop.permute.xlu0 %234  ;;  %v405_v48 = vld [vmem:[#allocation2 + $0x92] sm:$0xff] }
  0x96   : > { %v273_v59 = vmax.f32 %v1203_v11, %v237_v56  ;;  %v272_v60 = vmax.f32 %v1206_v12, %v235_v57  ;;  %v344_v6 = vld [vmem:[#allocation2 + $0x31] sm:$0xff] }
  0x97   : > { %510 = vrot.lane.b32.xlu0 %v342_v50, %s1119_s23  ;;  %329 = vst.msk [vmem:[#allocation2 + $0x51] sm:$0xff] %vm278_vm0, %v293_v55 }
  0x98   : > { %448 = vrot.lane.b32.xlu1 %v350_v58, %s1117_s21  ;;  %v295_v61 = vsel %vm278_vm0, %v273_v59, -inf  ;;  %v294_v62 = vsel %vm278_vm0, %v272_v60, -inf  ;;  %v333_v60 = vld [vmem:[#allocation2] sm:$0xff] }
  0x99   : > { %v296_v63 = vmax.f32 %v294_v62, %v295_v61  ;;  %v241_v0 = vpop.permute.xlu1 %240  ;;  %v239_v1 = vpop.permute.xlu0 %238 }
  0x9a   : > { %v275_v4 = vmax.f32 %v1211_v13, %v241_v0  ;;  %v274_v5 = vmax.f32 %v1214_v14, %v239_v1  ;;  %v1287_v21 = vld [vmem:[#allocation2 + $0x40] sm:$0xff] }
  0x9b   : > { %512 = vrot.lane.b32.xlu0 %v366_v2, %s1119_s23  ;;  %330 = vst.msk [vmem:[#allocation2 + $0x61] sm:$0xff] %vm278_vm0, %v296_v63  ;;  %v345_v25 = vld [vmem:[#allocation2 + $0x41] sm:$0xff] }
  0x9c   : > { %480 = vrot.lane.b32.xlu1 %v1256_v3, %s1118_s22  ;;  %v298_v7 = vsel %vm278_vm0, %v275_v4, -inf  ;;  %v297_v8 = vsel %vm278_vm0, %v274_v5, -inf  ;;  %v376_v28 = vld [vmem:[#allocation2 + $0x42] sm:$0xff] }
  0x9d   : > { %v299_v9 = vmax.f32 %v297_v8, %v298_v7  ;;  %v245_v10 = vpop.permute.xlu1 %244  ;;  %v243_v11 = vpop.permute.xlu0 %242 }
  0x9e   : > { %v277_v12 = vmax.f32 %v1219_v15, %v245_v10  ;;  %v276_v13 = vmax.f32 %v1222_v16, %v243_v11  ;;  %v352_v15 = vld [vmem:[#allocation2 + $0x32] sm:$0xff] }
  0x9f   : > { %420 = vrot.lane.b32.xlu0 %v344_v6, %s1116_s20  ;;  %331 = vst.msk [vmem:[#allocation2 + $0x71] sm:$0xff] %vm278_vm0, %v299_v9  ;;  %v1278_v16 = vld [vmem:[#allocation2 + $0x30] sm:$0xff] }
  0xa0   : > { %418 = vrot.lane.b32.xlu1 %v366_v2, %s1116_s20  ;;  %v301_v14 = vsel %vm278_vm0, %v277_v12, -inf  ;;  %v300_v17 = vsel %vm278_vm0, %v276_v13, -inf  ;;  %v346_v27 = vld [vmem:[#allocation2 + $0x51] sm:$0xff] }
  0xa1   : > { %v302_v18 = vmax.f32 %v300_v17, %v301_v14  ;;  %v354_v29 = vld [vmem:[#allocation2 + $0x52] sm:$0xff]  ;;  %v415_v39 = vpop.permute.xlu0 %414 }
  0xa2   : > { %v1317_v30 = vld [vmem:[#allocation2 + $0x50] sm:$0xff]  ;;  %v1323_v31 = vld [vmem:[#allocation2 + $0x60] sm:$0xff]  ;;  %v662_v63 = vsel %vm278_vm0, %v333_v60, %v415_v39 }
  0xa3   : > { %544 = vrot.lane.b32.xlu0 %v374_v19, %s1120_s24  ;;  %332 = vst.msk [vmem:[#allocation2 + $0x81] sm:$0xff] %vm278_vm0, %v302_v18  ;;  %v347_v32 = vld [vmem:[#allocation2 + $0x61] sm:$0xff] }
  0xa4   : > { %542 = vrot.lane.b32.xlu1 %v350_v58, %s1120_s24  ;;  %v378_v34 = vld [vmem:[#allocation2 + $0x62] sm:$0xff] }
  0xa5   : > { %v447_v40 = vpop.permute.xlu0 %446 }
  0xa6   : > { %v348_v33 = vld [vmem:[#allocation2 + $0x71] sm:$0xff] }
  0xa7   : > { %452 = vrot.lane.b32.xlu0 %v352_v15, %s1117_s21  ;;  %v356_v35 = vld [vmem:[#allocation2 + $0x72] sm:$0xff] }
  0xa8   : > { %450 = vrot.lane.b32.xlu1 %v374_v19, %s1117_s21  ;;  %v1341_v36 = vld [vmem:[#allocation2 + $0x70] sm:$0xff] }
  0xaa   : > { %v364_v37 = vld [vmem:[#allocation2 + $0x80] sm:$0xff] }
  0xab   : > { %576 = vrot.lane.b32.xlu0 %v1278_v16, %s1121_s25  ;;  %v372_v38 = vld [vmem:[#allocation2 + $0x81] sm:$0xff] }
  0xac   : > { %574 = vrot.lane.b32.xlu1 %v1256_v3, %s1121_s25  ;;  %v380_v41 = vld [vmem:[#allocation2 + $0x82] sm:$0xff] }
  0xaf   : > { %484 = vrot.lane.b32.xlu0 %v1287_v21, %s1118_s22 }
  0xb0   : > { %482 = vrot.lane.b32.xlu1 %v1278_v16, %s1118_s22 }
  0xb3   : > { %608 = vrot.lane.b32.xlu0 %v344_v6, %s1122_s7 }
  0xb4   : > { %606 = vrot.lane.b32.xlu1 %v366_v2, %s1122_s7  ;;  %v671_v2 = vsel %vm670_vm3, %v662_v63, %v447_v40 }
  0xb7   : > { %422 = vrot.lane.b32.xlu0 %v345_v25, %s1116_s20 }
  0xb8   : > { %514 = vrot.lane.b32.xlu1 %v344_v6, %s1119_s23 }
  0xbb   : > { %546 = vrot.lane.b32.xlu0 %v352_v15, %s1120_s24 }
  0xbc   : > { %638 = vrot.lane.b32.xlu1 %v374_v19, %s1123_s10 }
  0xbf   : > { %424 = vrot.lane.b32.xlu0 %v346_v27, %s1116_s20 }
  0xc0   : > { %516 = vrot.lane.b32.xlu1 %v345_v25, %s1119_s23 }
  0xc3   : > { %548 = vrot.lane.b32.xlu0 %v376_v28, %s1120_s24 }
  0xc4   : > { %640 = vrot.lane.b32.xlu1 %v352_v15, %s1123_s10 }
  0xc7   : > { %456 = vrot.lane.b32.xlu0 %v354_v29, %s1117_s21 }
  0xc8   : > { %454 = vrot.lane.b32.xlu1 %v376_v28, %s1117_s21 }
  0xcb   : > { %580 = vrot.lane.b32.xlu0 %v1317_v30, %s1121_s25 }
  0xcc   : > { %578 = vrot.lane.b32.xlu1 %v1287_v21, %s1121_s25 }
  0xcf   : > { %488 = vrot.lane.b32.xlu0 %v1323_v31, %s1118_s22 }
  0xd0   : > { %486 = vrot.lane.b32.xlu1 %v1317_v30, %s1118_s22 }
  0xd3   : > { %612 = vrot.lane.b32.xlu0 %v346_v27, %s1122_s7 }
  0xd4   : > { %610 = vrot.lane.b32.xlu1 %v345_v25, %s1122_s7 }
  0xd7   : > { %426 = vrot.lane.b32.xlu0 %v347_v32, %s1116_s20 }
  0xd8   : > { %518 = vrot.lane.b32.xlu1 %v346_v27, %s1119_s23 }
  0xdb   : > { %550 = vrot.lane.b32.xlu0 %v354_v29, %s1120_s24 }
  0xdc   : > { %642 = vrot.lane.b32.xlu1 %v376_v28, %s1123_s10 }
  0xdf   : > { %428 = vrot.lane.b32.xlu0 %v348_v33, %s1116_s20  ;;  %s181_s20 = scalar_lea.vmem %s1500_s3, %s1029_s17 }
  0xe0   : > { %520 = vrot.lane.b32.xlu1 %v347_v32, %s1119_s23 }
  0xe3   : > { %552 = vrot.lane.b32.xlu0 %v378_v34, %s1120_s24 }
  0xe4   : > { %644 = vrot.lane.b32.xlu1 %v354_v29, %s1123_s10 }
  0xe7   : > { %460 = vrot.lane.b32.xlu0 %v356_v35, %s1117_s21 }
  0xe8   : > { %458 = vrot.lane.b32.xlu1 %v378_v34, %s1117_s21 }
  0xeb   : > { %584 = vrot.lane.b32.xlu0 %v1341_v36, %s1121_s25 }
  0xec   : > { %582 = vrot.lane.b32.xlu1 %v1323_v31, %s1121_s25 }
  0xef   : > { %492 = vrot.lane.b32.xlu0 %v364_v37, %s1118_s22 }
  0xf0   : > { %490 = vrot.lane.b32.xlu1 %v1341_v36, %s1118_s22 }
  0xf3   : > { %616 = vrot.lane.b32.xlu0 %v348_v33, %s1122_s7 }
  0xf4   : > { %614 = vrot.lane.b32.xlu1 %v347_v32, %s1122_s7 }
  0xf7   : > { %524 = vrot.lane.b32.xlu0 %v372_v38, %s1119_s23 }
  0xf8   : > { %522 = vrot.lane.b32.xlu1 %v348_v33, %s1119_s23 }
  0xfb   : > { %648 = vrot.lane.b32.xlu0 %v356_v35, %s1123_s10 }
  0xfc   : > { %646 = vrot.lane.b32.xlu1 %v378_v34, %s1123_s10 }
  0xff   : > { %586 = vrot.lane.b32.xlu0 %v364_v37, %s1121_s25 }
 0x100   : > { %554 = vrot.lane.b32.xlu1 %v356_v35, %s1120_s24 }
 0x103   : > { %618 = vrot.lane.b32.xlu0 %v372_v38, %s1122_s7 }
 0x104   : > { %556 = vrot.lane.b32.xlu1 %v380_v41, %s1120_s24 }
 0x105   : > { %v479_v44 = vpop.permute.xlu0 %478 }
 0x106   : > { %v417_v43 = vpop.permute.xlu1 %416  ;;  %v680_v4 = vsel %vm679_vm4, %v671_v2, %v479_v44 }
 0x107   : > { %650 = vrot.lane.b32.xlu0 %v380_v41, %s1123_s10  ;;  %v663_v10 = vsel %vm278_vm0, %v1239_v49, %v417_v43 }
 0x108   : > { %588 = vrot.lane.b32.xlu1 %v389_v42, %s1121_s25 }
 0x109   : > { %v511_v47 = vpop.permute.xlu0 %510 }
 0x10a   : > { %v449_v46 = vpop.permute.xlu1 %448  ;;  %v689_v7 = vsel %vm688_vm5, %v680_v4, %v511_v47 }
 0x10b   : > { %v672_v14 = vsel %vm670_vm3, %v663_v10, %v449_v46 }
 0x10c   : > { %620 = vrot.lane.b32.xlu1 %v397_v45, %s1122_s7 }
 0x10d   : > { %v513_v51 = vpop.permute.xlu0 %512 }
 0x10e   : > { %v481_v50 = vpop.permute.xlu1 %480 }
 0x10f   : > { %v681_v18 = vsel %vm679_vm4, %v672_v14, %v481_v50 }
 0x110   : > { %652 = vrot.lane.b32.xlu1 %v405_v48, %s1123_s10  ;;  %v690_v20 = vsel %vm688_vm5, %v681_v18, %v513_v51 }
 0x111   : > { %v1364_v53 = vpop.permute.xlu0 %420 }
 0x112   : > { %v419_v52 = vpop.permute.xlu1 %418 }
 0x113   : > { %v664_v38 = vsel %vm278_vm0, %v1256_v3, %v419_v52  ;;  %v665_v3 = vsel %vm278_vm0, %v1278_v16, %v1364_v53 }
 0x115   : > { %v545_v55 = vpop.permute.xlu0 %544 }
 0x116   : > { %v543_v54 = vpop.permute.xlu1 %542  ;;  %v699_v22 = vsel %vm697_vm6, %v690_v20, %v545_v55 }
 0x117   : > { %v698_v8 = vsel %vm697_vm6, %v689_v7, %v543_v54 }
 0x119   : > { %v1366_v57 = vpop.permute.xlu0 %452 }
 0x11a   : > { %v451_v56 = vpop.permute.xlu1 %450  ;;  %v674_v51 = vsel %vm670_vm3, %v665_v3, %v1366_v57 }
 0x11b   : > { %v673_v39 = vsel %vm670_vm3, %v664_v38, %v451_v56 }
 0x11d   : > { %v577_v59 = vpop.permute.xlu0 %576 }
 0x11e   : > { %v575_v58 = vpop.permute.xlu1 %574  ;;  %v708_v49 = vsel %vm706_vm7, %v699_v22, %v577_v59 }
 0x11f   : > { %v707_v9 = vsel %vm706_vm7, %v698_v8, %v575_v58 }
 0x121   : > { %v485_v62 = vpop.permute.xlu0 %484 }
 0x122   : > { %v483_v61 = vpop.permute.xlu1 %482  ;;  %v683_v52 = vsel %vm679_vm4, %v674_v51, %v485_v62 }
 0x123   : > { %v682_v40 = vsel %vm679_vm4, %v673_v39, %v483_v61 }
 0x125   : > { %v609_v1 = vpop.permute.xlu0 %608 }
 0x126   : > { %v607_v0 = vpop.permute.xlu1 %606  ;;  %v717_v23 = vsel %vm715_vm8, %v708_v49, %v609_v1 }
 0x127   : > { %v716_v11 = vsel %vm715_vm8, %v707_v9, %v607_v0 }
 0x129   : > { %v1371_v6 = vpop.permute.xlu0 %422 }
 0x12a   : > { %v515_v5 = vpop.permute.xlu1 %514  ;;  %v666_v7 = vsel %vm278_vm0, %v1287_v21, %v1371_v6 }
 0x12b   : > { %v691_v43 = vsel %vm688_vm5, %v682_v40, %v515_v5 }
 0x12d   : > { %v547_v13 = vpop.permute.xlu0 %546 }
 0x12e   : > { %v639_v12 = vpop.permute.xlu1 %638  ;;  %v700_v44 = vsel %vm697_vm6, %v691_v43, %v547_v13 }
 0x12f   : > { %v725_v17 = vsel %vm724_vm9, %v716_v11, %v639_v12 }
 0x130   : > { %1066 = vmatprep.mubr.msk.f32.mxu0 %vm738_vm10, %v725_v17 }
 0x131   : > { %v425_v15 = vpop.permute.xlu0 %424 }
 0x132   : > { %v517_v19 = vpop.permute.xlu1 %516  ;;  %v667_v8 = vsel %vm278_vm0, %v1317_v30, %v425_v15 }
 0x133   : > { %v692_v56 = vsel %vm688_vm5, %v683_v52, %v517_v19 }
 0x135   : > { %v549_v25 = vpop.permute.xlu0 %548 }
 0x136   : > { %v641_v24 = vpop.permute.xlu1 %640  ;;  %v701_v58 = vsel %vm697_vm6, %v692_v56, %v549_v25 }
 0x137   : > { %v726_v26 = vsel %vm724_vm9, %v717_v23, %v641_v24 }
 0x138   : > { %1067 = vmatmul.mubr.msk.f32.vlgmr.msra.gmra.mxu0 %vm738_vm10, %v726_v26 }
 0x139   : > { %v457_v28 = vpop.permute.xlu0 %456 }
 0x13a   : > { %v455_v27 = vpop.permute.xlu1 %454  ;;  %v676_v10 = vsel %vm670_vm3, %v667_v8, %v457_v28 }
 0x13b   : > { %v675_v9 = vsel %vm670_vm3, %v666_v7, %v455_v27 }
 0x13d   : > { %v581_v32 = vpop.permute.xlu0 %580 }
 0x13e   : > { %v579_v29 = vpop.permute.xlu1 %578  ;;  %v710_v59 = vsel %vm706_vm7, %v701_v58, %v581_v32 }
 0x13f   : > { %v709_v45 = vsel %vm706_vm7, %v700_v44, %v579_v29 }
 0x141   : > { %v489_v34 = vpop.permute.xlu0 %488 }
 0x142   : > { %v487_v33 = vpop.permute.xlu1 %486  ;;  %v685_v12 = vsel %vm679_vm4, %v676_v10, %v489_v34 }
 0x143   : > { %v684_v11 = vsel %vm679_vm4, %v675_v9, %v487_v33 }
 0x145   : > { %v613_v37 = vpop.permute.xlu0 %612 }
 0x146   : > { %v611_v35 = vpop.permute.xlu1 %610  ;;  %v719_v60 = vsel %vm715_vm8, %v710_v59, %v613_v37 }
 0x147   : > { %v718_v46 = vsel %vm715_vm8, %v709_v45, %v611_v35 }
 0x149   : > { %v427_v42 = vpop.permute.xlu0 %426 }
 0x14a   : > { %v519_v41 = vpop.permute.xlu1 %518  ;;  %v668_v25 = vsel %vm278_vm0, %v1323_v31, %v427_v42 }
 0x14b   : > { %v693_v17 = vsel %vm688_vm5, %v684_v11, %v519_v41 }
 0x14d   : > { %v551_v48 = vpop.permute.xlu0 %550 }
 0x14e   : > { %v643_v47 = vpop.permute.xlu1 %642  ;;  %v702_v19 = vsel %vm697_vm6, %v693_v17, %v551_v48 }
 0x14f   : > { %v727_v50 = vsel %vm724_vm9, %v718_v46, %v643_v47 }
 0x150   : > { %1069 = vmatprep.mubr.msk.f32.mxu0 %vm738_vm10, %v727_v50 }
 0x151   : > { %v429_v55 = vpop.permute.xlu0 %428 }
 0x152   : > { %v521_v54 = vpop.permute.xlu1 %520  ;;  %v669_v41 = vsel %vm278_vm0, %v1341_v36, %v429_v55 }
 0x153   : > { %v694_v18 = vsel %vm688_vm5, %v685_v12, %v521_v54 }
 0x155   : > { %v553_v63 = vpop.permute.xlu0 %552 }
 0x156   : > { %v645_v61 = vpop.permute.xlu1 %644  ;;  %v703_v21 = vsel %vm697_vm6, %v694_v18, %v553_v63 }
 0x157   : > { %v728_v16 = vsel %vm724_vm9, %v719_v60, %v645_v61 }
 0x158   : > { %1070 = vmatmul.mubr.msk.f32.gmra.mxu0 %vm738_vm10, %v728_v16 }
 0x159   : > { %v461_v57 = vpop.permute.xlu0 %460 }
 0x15a   : > { %v459_v53 = vpop.permute.xlu1 %458  ;;  %v678_v42 = vsel %vm670_vm3, %v669_v41, %v461_v57 }
 0x15b   : > { %v677_v28 = vsel %vm670_vm3, %v668_v25, %v459_v53 }
 0x15d   : > { %v585_v62 = vpop.permute.xlu0 %584 }
 0x15e   : > { %v583_v0 = vpop.permute.xlu1 %582  ;;  %v712_v6 = vsel %vm706_vm7, %v703_v21, %v585_v62 }
 0x15f   : > { %v711_v30 = vsel %vm706_vm7, %v702_v19, %v583_v0 }
 0x161   : > { %v493_v2 = vpop.permute.xlu0 %492 }
 0x162   : > { %v491_v1 = vpop.permute.xlu1 %490  ;;  %v687_v43 = vsel %vm679_vm4, %v678_v42, %v493_v2 }
 0x163   : > { %v686_v29 = vsel %vm679_vm4, %v677_v28, %v491_v1 }
 0x165   : > { %v617_v5 = vpop.permute.xlu0 %616 }
 0x166   : > { %v615_v4 = vpop.permute.xlu1 %614  ;;  %v721_v20 = vsel %vm715_vm8, %v712_v6, %v617_v5 }
 0x167   : > { %v720_v15 = vsel %vm715_vm8, %v711_v30, %v615_v4 }
 0x169   : > { %v525_v14 = vpop.permute.xlu0 %524 }
 0x16a   : > { %v523_v13 = vpop.permute.xlu1 %522  ;;  %v696_v45 = vsel %vm688_vm5, %v687_v43, %v525_v14 }
 0x16b   : > { %v695_v32 = vsel %vm688_vm5, %v686_v29, %v523_v13 }
 0x16d   : > { %v649_v49 = vpop.permute.xlu0 %648 }
 0x16e   : > { %v647_v22 = vpop.permute.xlu1 %646  ;;  %v730_v23 = vsel %vm724_vm9, %v721_v20, %v649_v49 }
 0x16f   : > { %v729_v24 = vsel %vm724_vm9, %v720_v15, %v647_v22 }
 0x170   : > { %1072 = vmatprep.mubr.msk.f32.mxu1 %vm738_vm10, %v729_v24 }
 0x171   : > { %1073 = vmatmul.mubr.msk.f32.vlgmr.msra.gmra.mxu1 %vm738_vm10, %v730_v23  ;;  %v587_v27 = vpop.permute.xlu0 %586 }
 0x172   : > { %v555_v26 = vpop.permute.xlu1 %554 }
 0x173   : > { %v704_v33 = vsel %vm697_vm6, %v695_v32, %v555_v26 }
 0x174   : > { %v713_v37 = vsel %vm706_vm7, %v704_v33, %v587_v27 }
 0x175   : > { %v619_v35 = vpop.permute.xlu0 %618 }
 0x176   : > { %v557_v34 = vpop.permute.xlu1 %556  ;;  %v722_v38 = vsel %vm715_vm8, %v713_v37, %v619_v35 }
 0x177   : > { %v705_v46 = vsel %vm697_vm6, %v696_v45, %v557_v34 }
 0x179   : > { %v651_v40 = vpop.permute.xlu0 %650 }
 0x17a   : > { %v589_v39 = vpop.permute.xlu1 %588  ;;  %v731_v31 = vsel %vm724_vm9, %v722_v38, %v651_v40 }
 0x17b   : > { %1075 = vmatprep.mubr.msk.f32.mxu1 %vm738_vm10, %v731_v31  ;;  %v714_v47 = vsel %vm706_vm7, %v705_v46, %v589_v39 }
 0x17e   : > { %v621_v44 = vpop.permute.xlu1 %620 }
 0x17f   : > { %v723_v48 = vsel %vm715_vm8, %v714_v47, %v621_v44 }
 0x182   : > { %v653_v50 = vpop.permute.xlu1 %652 }
 0x183   : > { %v732_v3 = vsel %vm724_vm9, %v723_v48, %v653_v50 }
 0x184   : > { %1076 = vmatmul.mubr.msk.f32.gmra.mxu1 %vm738_vm10, %v732_v3 }
 0x1f8   : > { %v1068_v36 = vpop.f32.mrf.mxu0 }
 0x1f9   : > { %873 = vst.msk [vmem:[%s1456_s16 + $0x8] sm:$0xff] %vm670_vm3, %v1068_v36  ;;  %v902_v51 = vmul.f32 %v1068_v36, %v1068_v36  ;;  %v881_v54 = vsel %vm670_vm3, %v1068_v36, 0.0 }
 0x1fa   : > { %v833_v52 = vpop.f32.mrf.mxu0 }
 0x1fb   : > { %872 = vst.msk [vmem:[%s1456_s16] sm:$0xff] %vm670_vm3, %v833_v52  ;;  %v880_v55 = vsel %vm670_vm3, %v833_v52, 0.0  ;;  %v901_v56 = vmul.f32 %v833_v52, %v833_v52  ;;  %v910_v59 = vsel %vm670_vm3, %v902_v51, 0.0 }
 0x1fc   : > { %v882_v58 = vadd.f32 %v881_v54, %v880_v55 }
 0x1fd   : > { %v909_v60 = vsel %vm670_vm3, %v901_v56, 0.0 }
 0x1fe   : > { %v911_v61 = vadd.f32 %v910_v59, %v909_v60 }
 0x218   : > { %v1071_v63 = vpop.f32.mrf.mxu0 }
 0x219   : > { %875 = vst.msk [vmem:[%s1456_s16 + $0x18] sm:$0xff] %vm670_vm3, %v1071_v63  ;;  %v904_v4 = vmul.f32 %v1071_v63, %v1071_v63  ;;  %v885_v8 = vsel %vm670_vm3, %v1071_v63, 0.0 }
 0x21a   : > { %v843_v16 = vpop.f32.mrf.mxu0 }
 0x21b   : > { %874 = vst.msk [vmem:[%s1456_s16 + $0x10] sm:$0xff] %vm670_vm3, %v843_v16  ;;  %v903_v0 = vmul.f32 %v843_v16, %v843_v16  ;;  %v883_v62 = vsel %vm670_vm3, %v843_v16, 0.0  ;;  %v914_v11 = vsel %vm670_vm3, %v904_v4, 0.0 }
 0x21c   : > { %v884_v2 = vadd.f32 %v883_v62, %v882_v58 }
 0x21d   : > { %v912_v1 = vsel %vm670_vm3, %v903_v0, 0.0 }
 0x21e   : > { %v913_v7 = vadd.f32 %v912_v1, %v911_v61  ;;  %v886_v10 = vadd.f32 %v885_v8, %v884_v2 }
 0x220   : > { %v915_v13 = vadd.f32 %v914_v11, %v913_v7 }
 0x231   : > { %v1074_v53 = vpop.f32.mrf.mxu1 }
 0x232   : > { %877 = vst.msk [vmem:[%s1456_s16 + $0x28] sm:$0xff] %vm670_vm3, %v1074_v53  ;;  %v906_v17 = vmul.f32 %v1074_v53, %v1074_v53  ;;  %v889_v21 = vsel %vm670_vm3, %v1074_v53, 0.0 }
 0x233   : > { %v853_v57 = vpop.f32.mrf.mxu1 }
 0x234   : > { %876 = vst.msk [vmem:[%s1456_s16 + $0x20] sm:$0xff] %vm670_vm3, %v853_v57  ;;  %v905_v5 = vmul.f32 %v853_v57, %v853_v57  ;;  %v887_v9 = vsel %vm670_vm3, %v853_v57, 0.0  ;;  %v918_v15 = vsel %vm670_vm3, %v906_v17, 0.0 }
 0x235   : > { %v888_v14 = vadd.f32 %v887_v9, %v886_v10 }
 0x236   : > { %v916_v12 = vsel %vm670_vm3, %v905_v5, 0.0 }
 0x237   : > { %v917_v18 = vadd.f32 %v916_v12, %v915_v13  ;;  %v890_v6 = vadd.f32 %v889_v21, %v888_v14 }
 0x239   : > { %v919_v24 = vadd.f32 %v918_v15, %v917_v18 }
 0x244   : > { %v1077_v19 = vpop.f32.mrf.mxu1 }
 0x245   : > { %879 = vst.msk [vmem:[%s1456_s16 + $0x38] sm:$0xff] %vm670_vm3, %v1077_v19  ;;  %v908_v20 = vmul.f32 %v1077_v19, %v1077_v19  ;;  %v893_v25 = vsel %vm670_vm3, %v1077_v19, 0.0 }
 0x246   : > { %v863_v30 = vpop.f32.mrf.mxu1 }
 0x247   : > { %878 = vst.msk [vmem:[%s1456_s16 + $0x30] sm:$0xff] %vm670_vm3, %v863_v30  ;;  %v891_v22 = vsel %vm670_vm3, %v863_v30, 0.0  ;;  %v907_v49 = vmul.f32 %v863_v30, %v863_v30  ;;  %v922_v29 = vsel %vm670_vm3, %v908_v20, 0.0 }
 0x248   : > { %v892_v23 = vadd.f32 %v891_v22, %v890_v6 }
 0x249   : > { %v920_v26 = vsel %vm670_vm3, %v907_v49, 0.0 }
 0x24a   : > { %v894_v27 = vadd.f32 %v893_v25, %v892_v23  ;;  %v921_v28 = vadd.f32 %v920_v26, %v919_v24 }
 0x24c   : > { %v895_v32 = vrot.slane %v894_v27, 4  ;;  %v923_v33 = vadd.f32 %v922_v29, %v921_v28 }
 0x24e   : > { %v896_v34 = vadd.f32 %v895_v32, %v894_v27  ;;  %v924_v35 = vrot.slane %v923_v33, 4 }
 0x250   : > { %v897_v37 = vrot.slane %v896_v34, 2  ;;  %v925_v38 = vadd.f32 %v924_v35, %v923_v33 }
 0x252   : > { %v898_v39 = vadd.f32 %v897_v37, %v896_v34  ;;  %v926_v40 = vrot.slane %v925_v38, 2 }
 0x254   : > { %v899_v31 = vrot.slane %v898_v39, 1  ;;  %v927_v41 = vadd.f32 %v926_v40, %v925_v38 }
 0x256   : > { %v928_v42 = vrot.slane %v927_v41, 1  ;;  %v900_v43 = vadd.f32 %v899_v31, %v898_v39 }
 0x258   : > { %v929_v44 = vadd.f32 %v928_v42, %v927_v41 }
 0x25a   : > { %v931_v45 = vsel %vm930_vm11, %v900_v43, %v929_v44 }
 0x25b   : > { %933 = vst.msk [vmem:[%s181_s20] sm:$0x3] %vm932_vm12, %v931_v45 }
 0x25c PF: > { %s14_s12 = sadd.s32 1, %s1112_s12  }
 0x25d   : > { %p11_p4 = scmp.ge.s32.totalorder %s14_s12, 4  }
 0x25f   :  { %13 = sbr.rel (!%p11_p4) target bundleno = 1 (0x1), region = 72 }

</bundles_post_ra>
